<compile_context>
chip_gen: v7x
topology: tpu7x:2x2x1
jax: 0.10.0
libtpu: 0.0.40
codegen_flags: <defaults>
</compile_context>

<pallas_src>
import functools
from math import sqrt

import jax
import jax.numpy as jnp
from jax.experimental import pallas as pl
from jax.experimental.pallas import tpu as pltpu


# Per-layer tensors, in the fixed order used for both the pallas_call args and the
# kernel ref unpacking.  All are stacked over layers with a leading L dim.
_LAYER_TENSORS = (
    # self-attention
    "wq_sa", "wk_sa", "wv_sa", "bq_sa", "bk_sa", "bv_sa", "wo_sa", "bo_sa",
    "ln1_g", "ln1_b",
    # cross-attention
    "wq_ca", "wk_ca", "wv_ca", "bq_ca", "bk_ca", "bv_ca", "wo_ca", "bo_ca",
    "ln2_g", "ln2_b",
    # feed-forward
    "w1", "b1", "w2", "b2", "ln3_g", "ln3_b",
)
_N_FIXED = 6  # x, context, mask, causal_bias, w_out, b_out


# ------------------------------ kernel helpers ------------------------------


def _layernorm(x, g, b):
    mean = jnp.mean(x, axis=-1, keepdims=True)
    var = jnp.mean((x - mean) ** 2, axis=-1, keepdims=True)
    return (x - mean) * jax.lax.rsqrt(var + 1e-5) * g + b


def _mha(xq, xkv, wq, wk, wv, bq, bk, bv, wo, bo, bias, *, num_heads, head_dim):
    """All heads in batched (head-leading) contractions; no loop/concat/transpose.

    xq: (T, D), xkv: (S, D); w{q,k,v}: (H, D, dh); b{q,k,v}: (H, 1, dh);
    wo: (H, dh, D); bo: (1, D); bias: (T, S) or None.  Returns (T, D).
    """
    H = num_heads
    scale = 1.0 / sqrt(head_dim)
    proj_dims = (((2,), (1,)), ((0,), (0,)))        # 'htd,hdk->htk'
    qb = jnp.broadcast_to(xq, (H,) + xq.shape)      # (H, T, D)
    kb = jnp.broadcast_to(xkv, (H,) + xkv.shape)    # (H, S, D)
    q = jax.lax.dot_general(qb, wq, proj_dims, preferred_element_type=jnp.float32) + bq
    k = jax.lax.dot_general(kb, wk, proj_dims, preferred_element_type=jnp.float32) + bk
    v = jax.lax.dot_general(kb, wv, proj_dims, preferred_element_type=jnp.float32) + bv
    s = jax.lax.dot_general(q, k, (((2,), (2,)), ((0,), (0,))),
                            preferred_element_type=jnp.float32) * scale   # (H, T, S)
    if bias is not None:
        s = s + bias[None, :, :]
    m = jnp.max(s, axis=-1, keepdims=True)
    p = jnp.exp(s - m)
    p = p / jnp.sum(p, axis=-1, keepdims=True)      # exact f32 softmax
    o = jax.lax.dot_general(p, v, (((2,), (1,)), ((0,), (0,))),
                            preferred_element_type=jnp.float32)           # (H, T, dh)
    proj = jax.lax.dot_general(o, wo, (((2,), (1,)), ((0,), (0,))),
                               preferred_element_type=jnp.float32)        # (H, T, D)
    return jnp.sum(proj, axis=0) + bo               # (T, D)


# ------------------------------ fused kernel --------------------------------


def _decoder_stack_kernel(*refs, num_heads, head_dim):
    """Whole decoder stack + output projection in one pallas_call.

    grid = (B, num_layers); batch axis 'parallel', layer axis 'arbitrary'.
    The layer activation is carried across the layer axis in VMEM scratch;
    lane-dense logits are written only on the last layer step.
    """
    x_ref, ctx_ref, mask_ref, bias_ref, wout_ref, bout_ref = refs[:_N_FIXED]
    lw = dict(zip(_LAYER_TENSORS, refs[_N_FIXED:_N_FIXED + len(_LAYER_TENSORS)]))
    o_ref = refs[_N_FIXED + len(_LAYER_TENSORS)]
    h_ref = refs[_N_FIXED + len(_LAYER_TENSORS) + 1]

    layer = pl.program_id(1)

    @pl.when(layer == 0)
    def _init():
        h_ref[...] = x_ref[0]                       # embedded (+PE, masked) input

    x0 = h_ref[...]                                 # (T, D)

    # --- causal self-attention + residual + LayerNorm ---
    sa = _mha(x0, x0,
              lw["wq_sa"][0], lw["wk_sa"][0], lw["wv_sa"][0],
              lw["bq_sa"][0], lw["bk_sa"][0], lw["bv_sa"][0],
              lw["wo_sa"][0], lw["bo_sa"][0], bias_ref[...],
              num_heads=num_heads, head_dim=head_dim)
    x1 = _layernorm(x0 + sa, lw["ln1_g"][0], lw["ln1_b"][0])

    # --- cross-attention over encoder context + residual + LayerNorm ---
    ca = _mha(x1, ctx_ref[0],
              lw["wq_ca"][0], lw["wk_ca"][0], lw["wv_ca"][0],
              lw["bq_ca"][0], lw["bk_ca"][0], lw["bv_ca"][0],
              lw["wo_ca"][0], lw["bo_ca"][0], None,
              num_heads=num_heads, head_dim=head_dim)
    x2 = _layernorm(x1 + ca, lw["ln2_g"][0], lw["ln2_b"][0])

    # --- FFN (hidden = 4D = one lane width, stays on-chip) + residual + LN + mask ---
    hid = jnp.dot(x2, lw["w1"][0], preferred_element_type=jnp.float32) + lw["b1"][0]
    hid = jnp.maximum(hid, 0.0)
    y = x2 + jnp.dot(hid, lw["w2"][0], preferred_element_type=jnp.float32) + lw["b2"][0]
    x3 = _layernorm(y, lw["ln3_g"][0], lw["ln3_b"][0]) * mask_ref[0]

    h_ref[...] = x3                                 # carry to next layer step

    # --- fused lane-dense (vocab padded to 128) output projection on last layer ---
    @pl.when(layer == pl.num_programs(1) - 1)
    def _finalize():
        o_ref[0] = (jnp.dot(x3, wout_ref[...], preferred_element_type=jnp.float32)
                    + bout_ref[...])


# ------------------------------ forward wrapper ------------------------------


def transformer_decoder_forward(packed, tokens, context, PE, *, num_heads, voca_size):
    """train=True branch of Transformer_decoder.forward (one pallas_call total).

    Embedding gather stays in XLA (no clean small-gather Pallas path)."""
    B, T = tokens.shape
    D = packed["embedding"].shape[1]
    Tc = context.shape[1]
    L = packed["w1"].shape[0]
    Vp = packed["w_out_pad"].shape[1]
    dh = D // num_heads

    mask = (tokens != 0).astype(jnp.float32)[..., None]        # (B, T, 1)
    x = (packed["embedding"][tokens] + PE) * mask              # (B, T, D)

    # causal bias hoisted out of the kernel body (constant-index input)
    row = jax.lax.broadcasted_iota(jnp.int32, (T, T), 0)
    col = jax.lax.broadcasted_iota(jnp.int32, (T, T), 1)
    causal_bias = jnp.where(row >= col, 0.0, -1e9).astype(jnp.float32)

    def _layer_spec(arr):
        nd = arr.ndim
        return pl.BlockSpec((1,) + arr.shape[1:],
                            lambda b, l, _nd=nd: (l,) + (0,) * (_nd - 1))

    in_specs = [
        pl.BlockSpec((1, T, D), lambda b, l: (b, 0, 0)),       # embedded input
        pl.BlockSpec((1, Tc, D), lambda b, l: (b, 0, 0)),      # context
        pl.BlockSpec((1, T, 1), lambda b, l: (b, 0, 0)),       # padding mask
        pl.BlockSpec((T, T), lambda b, l: (0, 0)),             # causal bias
        pl.BlockSpec((D, Vp), lambda b, l: (0, 0)),            # vocab projection (padded)
        pl.BlockSpec((1, Vp), lambda b, l: (0, 0)),
    ] + [_layer_spec(packed[name]) for name in _LAYER_TENSORS]

    logits_pad = pl.pallas_call(
        functools.partial(_decoder_stack_kernel, num_heads=num_heads, head_dim=dh),
        out_shape=jax.ShapeDtypeStruct((B, T, Vp), jnp.float32),
        grid=(B, L),
        in_specs=in_specs,
        out_specs=pl.BlockSpec((1, T, Vp), lambda b, l: (b, 0, 0)),
        scratch_shapes=[pltpu.VMEM((T, D), jnp.float32)],       # layer-carry buffer
        compiler_params=pltpu.CompilerParams(
            dimension_semantics=("parallel", "arbitrary")),
    )(x, context, mask, causal_bias, packed["w_out_pad"], packed["b_out_pad"],
      *[packed[name] for name in _LAYER_TENSORS])

    return logits_pad[..., :voca_size]


# ------------------------------ parameters -----------------------------------


def _dense(key, fan_in, fan_out):
    return 0.02 * jax.random.normal(key, (fan_in, fan_out), dtype=jnp.float32)


def init_raw_params(key, num_layers, voca_size, D):
    """Standard (PyTorch-like) parameter layout."""
    F = 4 * D

    def layer(k):
        ks = jax.random.split(k, 10)
        p = {
            "wq_sa": _dense(ks[0], D, D), "wk_sa": _dense(ks[1], D, D),
            "wv_sa": _dense(ks[2], D, D), "wo_sa": _dense(ks[3], D, D),
            "wq_ca": _dense(ks[4], D, D), "wk_ca": _dense(ks[5], D, D),
            "wv_ca": _dense(ks[6], D, D), "wo_ca": _dense(ks[7], D, D),
            "w1": _dense(ks[8], D, F), "w2": _dense(ks[9], F, D),
        }
        for n in ("bq_sa", "bk_sa", "bv_sa", "bo_sa",
                  "bq_ca", "bk_ca", "bv_ca", "bo_ca", "b2"):
            p[n] = jnp.zeros((D,), jnp.float32)
        p["b1"] = jnp.zeros((F,), jnp.float32)
        for n in ("ln1", "ln2", "ln3"):
            p[n + "_g"] = jnp.ones((D,), jnp.float32)
            p[n + "_b"] = jnp.zeros((D,), jnp.float32)
        return p

    ks = jax.random.split(key, num_layers + 2)
    return {
        "embedding": 0.02 * jax.random.normal(ks[0], (voca_size, D), dtype=jnp.float32),
        "w_out": _dense(ks[1], D, voca_size),
        "b_out": jnp.zeros((voca_size,), jnp.float32),
        "layers": [layer(ks[2 + i]) for i in range(num_layers)],
    }


def pack_params(raw, num_heads):
    """One-time repack into the kernel layout: head-major attention weights,
    layer-stacked tensors, lane-padded (multiple of 128) vocab projection."""
    D = raw["embedding"].shape[1]
    H = num_heads
    dh = D // H
    F = 4 * D
    layers = raw["layers"]

    def stack(fn):
        return jnp.stack([fn(lp) for lp in layers])

    packed = {"embedding": raw["embedding"]}
    for t in ("sa", "ca"):
        for n in ("q", "k", "v"):
            packed[f"w{n}_{t}"] = stack(
                lambda lp, n=n, t=t: lp[f"w{n}_{t}"].reshape(D, H, dh).transpose(1, 0, 2))
            packed[f"b{n}_{t}"] = stack(
                lambda lp, n=n, t=t: lp[f"b{n}_{t}"].reshape(H, 1, dh))
        packed[f"wo_{t}"] = stack(lambda lp, t=t: lp[f"wo_{t}"].reshape(H, dh, D))
        packed[f"bo_{t}"] = stack(lambda lp, t=t: lp[f"bo_{t}"].reshape(1, D))
    for n in ("ln1_g", "ln1_b", "ln2_g", "ln2_b", "ln3_g", "ln3_b", "b2"):
        packed[n] = stack(lambda lp, n=n: lp[n].reshape(1, D))
    packed["w1"] = stack(lambda lp: lp["w1"])
    packed["b1"] = stack(lambda lp: lp["b1"].reshape(1, F))
    packed["w2"] = stack(lambda lp: lp["w2"])

    voca_size = raw["w_out"].shape[1]
    Vp = ((voca_size + 127) // 128) * 128
    packed["w_out_pad"] = jnp.zeros((D, Vp), jnp.float32).at[:, :voca_size].set(raw["w_out"])
    packed["b_out_pad"] = jnp.zeros((1, Vp), jnp.float32).at[0, :voca_size].set(raw["b_out"])
    return packed


# --------------------------------- main ---------------------------------------


if __name__ == "__main__":
    num_layers, num_heads = 2, 4
    voca_size, embedding_dim, max_len = 50, 32, 8
    batch, seq, ctx_len = 2, 8, 8

    key = jax.random.PRNGKey(0)
    k_par, k_tok, k_ctx = jax.random.split(key, 3)

    raw = init_raw_params(k_par, num_layers, voca_size, embedding_dim)
    packed = pack_params(raw, num_heads)

    # token ids in [1, voca_size); trailing positions set to 0 to exercise the mask
    tokens = jax.random.randint(k_tok, (batch, seq), 1, voca_size, dtype=jnp.int32)
    tokens = tokens.at[:, -2:].set(0)

    context = jax.random.normal(k_ctx, (batch, ctx_len, embedding_dim), dtype=jnp.float32)

    # sinusoidal positional encoding (T, D), broadcast over batch
    pos = jnp.arange(seq, dtype=jnp.float32)[:, None]
    dim = jnp.arange(embedding_dim, dtype=jnp.float32)[None, :]
    angle = pos / jnp.power(10000.0, (2.0 * jnp.floor(dim / 2.0)) / embedding_dim)
    PE = jnp.where((jnp.arange(embedding_dim) % 2 == 0)[None, :],
                   jnp.sin(angle), jnp.cos(angle)).astype(jnp.float32)

    fwd = jax.jit(functools.partial(transformer_decoder_forward,
                                    num_heads=num_heads, voca_size=voca_size))
    logits = fwd(packed, tokens, context, PE)
    jax.block_until_ready(logits)

    assert logits.shape == (batch, seq, voca_size)
    assert bool(jnp.all(jnp.isfinite(logits)))
    print("KERNEL_OK")
</pallas_src>

<mosaic_0001>
module attributes {stable_mosaic.version = 11 : i64} {
  func.func @_decoder_stack_kernel(%arg0: i32, %arg1: i32, %arg2: memref<1x8x32xf32, #tpu.memory_space<vmem>>, %arg3: memref<1x8x32xf32, #tpu.memory_space<vmem>>, %arg4: memref<1x8x1xf32, #tpu.memory_space<vmem>>, %arg5: memref<8x8xf32, #tpu.memory_space<vmem>>, %arg6: memref<32x128xf32, #tpu.memory_space<vmem>>, %arg7: memref<1x128xf32, #tpu.memory_space<vmem>>, %arg8: memref<1x4x32x8xf32, #tpu.memory_space<vmem>>, %arg9: memref<1x4x32x8xf32, #tpu.memory_space<vmem>>, %arg10: memref<1x4x32x8xf32, #tpu.memory_space<vmem>>, %arg11: memref<1x4x1x8xf32, #tpu.memory_space<vmem>>, %arg12: memref<1x4x1x8xf32, #tpu.memory_space<vmem>>, %arg13: memref<1x4x1x8xf32, #tpu.memory_space<vmem>>, %arg14: memref<1x4x8x32xf32, #tpu.memory_space<vmem>>, %arg15: memref<1x1x32xf32, #tpu.memory_space<vmem>>, %arg16: memref<1x1x32xf32, #tpu.memory_space<vmem>>, %arg17: memref<1x1x32xf32, #tpu.memory_space<vmem>>, %arg18: memref<1x4x32x8xf32, #tpu.memory_space<vmem>>, %arg19: memref<1x4x32x8xf32, #tpu.memory_space<vmem>>, %arg20: memref<1x4x32x8xf32, #tpu.memory_space<vmem>>, %arg21: memref<1x4x1x8xf32, #tpu.memory_space<vmem>>, %arg22: memref<1x4x1x8xf32, #tpu.memory_space<vmem>>, %arg23: memref<1x4x1x8xf32, #tpu.memory_space<vmem>>, %arg24: memref<1x4x8x32xf32, #tpu.memory_space<vmem>>, %arg25: memref<1x1x32xf32, #tpu.memory_space<vmem>>, %arg26: memref<1x1x32xf32, #tpu.memory_space<vmem>>, %arg27: memref<1x1x32xf32, #tpu.memory_space<vmem>>, %arg28: memref<1x32x128xf32, #tpu.memory_space<vmem>>, %arg29: memref<1x1x128xf32, #tpu.memory_space<vmem>>, %arg30: memref<1x128x32xf32, #tpu.memory_space<vmem>>, %arg31: memref<1x1x32xf32, #tpu.memory_space<vmem>>, %arg32: memref<1x1x32xf32, #tpu.memory_space<vmem>>, %arg33: memref<1x1x32xf32, #tpu.memory_space<vmem>>, %arg34: memref<1x8x128xf32, #tpu.memory_space<vmem>>, %arg35: memref<8x32xf32, #tpu.memory_space<vmem>>) attributes {dimension_semantics = [#tpu.dimension_semantics<parallel>, #tpu.dimension_semantics<arbitrary>], iteration_bounds = array<i64: 2, 2>, scalar_prefetch = 0 : i64, scratch_operands = 1 : i64, tpu.core_type = #tpu.core_type<tc>, window_params = [{transform_indices = @transform_0, window_bounds = array<i64: 1, 8, 32>}, {transform_indices = @transform_1, window_bounds = array<i64: 1, 8, 32>}, {transform_indices = @transform_2, window_bounds = array<i64: 1, 8, 1>}, {pipeline_mode = #tpu.pipeline_mode<synchronous>, transform_indices = @transform_3, window_bounds = array<i64: 8, 8>}, {pipeline_mode = #tpu.pipeline_mode<synchronous>, transform_indices = @transform_4, window_bounds = array<i64: 32, 128>}, {pipeline_mode = #tpu.pipeline_mode<synchronous>, transform_indices = @transform_5, window_bounds = array<i64: 1, 128>}, {transform_indices = @transform_6, window_bounds = array<i64: 1, 4, 32, 8>}, {transform_indices = @transform_7, window_bounds = array<i64: 1, 4, 32, 8>}, {transform_indices = @transform_8, window_bounds = array<i64: 1, 4, 32, 8>}, {transform_indices = @transform_9, window_bounds = array<i64: 1, 4, 1, 8>}, {transform_indices = @transform_10, window_bounds = array<i64: 1, 4, 1, 8>}, {transform_indices = @transform_11, window_bounds = array<i64: 1, 4, 1, 8>}, {transform_indices = @transform_12, window_bounds = array<i64: 1, 4, 8, 32>}, {transform_indices = @transform_13, window_bounds = array<i64: 1, 1, 32>}, {transform_indices = @transform_14, window_bounds = array<i64: 1, 1, 32>}, {transform_indices = @transform_15, window_bounds = array<i64: 1, 1, 32>}, {transform_indices = @transform_16, window_bounds = array<i64: 1, 4, 32, 8>}, {transform_indices = @transform_17, window_bounds = array<i64: 1, 4, 32, 8>}, {transform_indices = @transform_18, window_bounds = array<i64: 1, 4, 32, 8>}, {transform_indices = @transform_19, window_bounds = array<i64: 1, 4, 1, 8>}, {transform_indices = @transform_20, window_bounds = array<i64: 1, 4, 1, 8>}, {transform_indices = @transform_21, window_bounds = array<i64: 1, 4, 1, 8>}, {transform_indices = @transform_22, window_bounds = array<i64: 1, 4, 8, 32>}, {transform_indices = @transform_23, window_bounds = array<i64: 1, 1, 32>}, {transform_indices = @transform_24, window_bounds = array<i64: 1, 1, 32>}, {transform_indices = @transform_25, window_bounds = array<i64: 1, 1, 32>}, {transform_indices = @transform_26, window_bounds = array<i64: 1, 32, 128>}, {transform_indices = @transform_27, window_bounds = array<i64: 1, 1, 128>}, {transform_indices = @transform_28, window_bounds = array<i64: 1, 128, 32>}, {transform_indices = @transform_29, window_bounds = array<i64: 1, 1, 32>}, {transform_indices = @transform_30, window_bounds = array<i64: 1, 1, 32>}, {transform_indices = @transform_31, window_bounds = array<i64: 1, 1, 32>}, {transform_indices = @transform_32, window_bounds = array<i64: 1, 8, 128>}]} {
    %c0_i32 = arith.constant 0 : i32
    %0 = arith.cmpi eq, %arg1, %c0_i32 : i32
    %1 = arith.extui %0 : i1 to i32
    %c0_i32_0 = arith.constant 0 : i32
    %2 = arith.cmpi ne, %1, %c0_i32_0 : i32
    scf.if %2 {
      %c0_142 = arith.constant 0 : index
      %c0_143 = arith.constant 0 : index
      %c0_144 = arith.constant 0 : index
      %207 = vector.load %arg2[%c0_142, %c0_143, %c0_144] : memref<1x8x32xf32, #tpu.memory_space<vmem>>, vector<1x8x32xf32>
      %208 = vector.shape_cast %207 : vector<1x8x32xf32> to vector<8x32xf32>
      %c0_145 = arith.constant 0 : index
      %c0_146 = arith.constant 0 : index
      %209 = vector.load %arg35[%c0_145, %c0_146] : memref<8x32xf32, #tpu.memory_space<vmem>>, vector<8x32xf32>
      tpu.vector_store %arg35[%c0_145, %c0_146], %208 {strides = array<i32>} : memref<8x32xf32, #tpu.memory_space<vmem>>, vector<8x32xf32>,
    } else {
    }
    %c0 = arith.constant 0 : index
    %c0_1 = arith.constant 0 : index
    %3 = vector.load %arg35[%c0, %c0_1] : memref<8x32xf32, #tpu.memory_space<vmem>>, vector<8x32xf32>
    %c0_2 = arith.constant 0 : index
    %c0_3 = arith.constant 0 : index
    %c0_4 = arith.constant 0 : index
    %c0_5 = arith.constant 0 : index
    %4 = vector.load %arg8[%c0_2, %c0_3, %c0_4, %c0_5] : memref<1x4x32x8xf32, #tpu.memory_space<vmem>>, vector<1x4x32x8xf32>
    %5 = vector.shape_cast %4 : vector<1x4x32x8xf32> to vector<4x32x8xf32>
    %c0_6 = arith.constant 0 : index
    %c0_7 = arith.constant 0 : index
    %c0_8 = arith.constant 0 : index
    %c0_9 = arith.constant 0 : index
    %6 = vector.load %arg9[%c0_6, %c0_7, %c0_8, %c0_9] : memref<1x4x32x8xf32, #tpu.memory_space<vmem>>, vector<1x4x32x8xf32>
    %7 = vector.shape_cast %6 : vector<1x4x32x8xf32> to vector<4x32x8xf32>
    %c0_10 = arith.constant 0 : index
    %c0_11 = arith.constant 0 : index
    %c0_12 = arith.constant 0 : index
    %c0_13 = arith.constant 0 : index
    %8 = vector.load %arg10[%c0_10, %c0_11, %c0_12, %c0_13] : memref<1x4x32x8xf32, #tpu.memory_space<vmem>>, vector<1x4x32x8xf32>
    %9 = vector.shape_cast %8 : vector<1x4x32x8xf32> to vector<4x32x8xf32>
    %c0_14 = arith.constant 0 : index
    %c0_15 = arith.constant 0 : index
    %c0_16 = arith.constant 0 : index
    %c0_17 = arith.constant 0 : index
    %10 = vector.load %arg11[%c0_14, %c0_15, %c0_16, %c0_17] : memref<1x4x1x8xf32, #tpu.memory_space<vmem>>, vector<1x4x1x8xf32>
    %11 = vector.shape_cast %10 : vector<1x4x1x8xf32> to vector<4x1x8xf32>
    %c0_18 = arith.constant 0 : index
    %c0_19 = arith.constant 0 : index
    %c0_20 = arith.constant 0 : index
    %c0_21 = arith.constant 0 : index
    %12 = vector.load %arg12[%c0_18, %c0_19, %c0_20, %c0_21] : memref<1x4x1x8xf32, #tpu.memory_space<vmem>>, vector<1x4x1x8xf32>
    %13 = vector.shape_cast %12 : vector<1x4x1x8xf32> to vector<4x1x8xf32>
    %c0_22 = arith.constant 0 : index
    %c0_23 = arith.constant 0 : index
    %c0_24 = arith.constant 0 : index
    %c0_25 = arith.constant 0 : index
    %14 = vector.load %arg13[%c0_22, %c0_23, %c0_24, %c0_25] : memref<1x4x1x8xf32, #tpu.memory_space<vmem>>, vector<1x4x1x8xf32>
    %15 = vector.shape_cast %14 : vector<1x4x1x8xf32> to vector<4x1x8xf32>
    %c0_26 = arith.constant 0 : index
    %c0_27 = arith.constant 0 : index
    %c0_28 = arith.constant 0 : index
    %c0_29 = arith.constant 0 : index
    %16 = vector.load %arg14[%c0_26, %c0_27, %c0_28, %c0_29] : memref<1x4x8x32xf32, #tpu.memory_space<vmem>>, vector<1x4x8x32xf32>
    %17 = vector.shape_cast %16 : vector<1x4x8x32xf32> to vector<4x8x32xf32>
    %c0_30 = arith.constant 0 : index
    %c0_31 = arith.constant 0 : index
    %c0_32 = arith.constant 0 : index
    %18 = vector.load %arg15[%c0_30, %c0_31, %c0_32] : memref<1x1x32xf32, #tpu.memory_space<vmem>>, vector<1x1x32xf32>
    %19 = vector.shape_cast %18 : vector<1x1x32xf32> to vector<1x32xf32>
    %c0_33 = arith.constant 0 : index
    %c0_34 = arith.constant 0 : index
    %20 = vector.load %arg5[%c0_33, %c0_34] : memref<8x8xf32, #tpu.memory_space<vmem>>, vector<8x8xf32>
    %21 = vector.shape_cast %3 : vector<8x32xf32> to vector<1x8x32xf32>
    %22 = vector.broadcast %21 : vector<1x8x32xf32> to vector<4x8x32xf32>
    %23 = vector.shape_cast %3 : vector<8x32xf32> to vector<1x8x32xf32>
    %24 = vector.broadcast %23 : vector<1x8x32xf32> to vector<4x8x32xf32>
    %cst = arith.constant dense<0.000000e+00> : vector<4x8x8xf32>
    %25 = tpu.matmul %22, %5, %cst {dimension_numbers = #tpu.dot_dimension_numbers<[2], [1], [1], [2], [0, 0, 0, 1, 1, 2], [0], [0]>} : vector<4x8x32xf32>, vector<4x32x8xf32>, vector<4x8x8xf32> -> vector<4x8x8xf32>
    %26 = vector.broadcast %11 : vector<4x1x8xf32> to vector<4x8x8xf32>
    %27 = arith.addf %25, %26 : vector<4x8x8xf32>
    %cst_35 = arith.constant dense<0.000000e+00> : vector<4x8x8xf32>
    %28 = tpu.matmul %24, %7, %cst_35 {dimension_numbers = #tpu.dot_dimension_numbers<[2], [1], [1], [2], [0, 0, 0, 1, 1, 2], [0], [0]>} : vector<4x8x32xf32>, vector<4x32x8xf32>, vector<4x8x8xf32> -> vector<4x8x8xf32>
    %29 = vector.broadcast %13 : vector<4x1x8xf32> to vector<4x8x8xf32>
    %30 = arith.addf %28, %29 : vector<4x8x8xf32>
    %cst_36 = arith.constant dense<0.000000e+00> : vector<4x8x8xf32>
    %31 = tpu.matmul %24, %9, %cst_36 {dimension_numbers = #tpu.dot_dimension_numbers<[2], [1], [1], [2], [0, 0, 0, 1, 1, 2], [0], [0]>} : vector<4x8x32xf32>, vector<4x32x8xf32>, vector<4x8x8xf32> -> vector<4x8x8xf32>
    %32 = vector.broadcast %15 : vector<4x1x8xf32> to vector<4x8x8xf32>
    %33 = arith.addf %31, %32 : vector<4x8x8xf32>
    %cst_37 = arith.constant dense<0.000000e+00> : vector<4x8x8xf32>
    %34 = tpu.matmul %27, %30, %cst_37 {dimension_numbers = #tpu.dot_dimension_numbers<[2], [2], [1], [1], [0, 0, 0, 1, 1, 1], [0], [0]>} : vector<4x8x8xf32>, vector<4x8x8xf32>, vector<4x8x8xf32> -> vector<4x8x8xf32>
    %cst_38 = arith.constant 0.353553385 : f32
    %35 = vector.broadcast %cst_38 : f32 to vector<4x8x8xf32>
    %36 = arith.mulf %34, %35 : vector<4x8x8xf32>
    %37 = vector.shape_cast %20 : vector<8x8xf32> to vector<1x8x8xf32>
    %38 = vector.broadcast %37 : vector<1x8x8xf32> to vector<4x8x8xf32>
    %39 = arith.addf %36, %38 : vector<4x8x8xf32>
    %cst_39 = arith.constant dense<0xFF800000> : vector<4x8xf32>
    %40 = vector.multi_reduction <maximumf>, %39, %cst_39 [2] : vector<4x8x8xf32> to vector<4x8xf32>
    %41 = vector.shape_cast %40 : vector<4x8xf32> to vector<4x8x1xf32>
    %42 = vector.broadcast %41 : vector<4x8x1xf32> to vector<4x8x8xf32>
    %43 = arith.subf %39, %42 : vector<4x8x8xf32>
    %44 = math.exp %43 : vector<4x8x8xf32>
    %cst_40 = arith.constant dense<0.000000e+00> : vector<4x8xf32>
    %45 = vector.multi_reduction <add>, %44, %cst_40 [2] : vector<4x8x8xf32> to vector<4x8xf32>
    %46 = vector.shape_cast %45 : vector<4x8xf32> to vector<4x8x1xf32>
    %47 = vector.broadcast %46 : vector<4x8x1xf32> to vector<4x8x8xf32>
    %48 = arith.divf %44, %47 : vector<4x8x8xf32>
    %cst_41 = arith.constant dense<0.000000e+00> : vector<4x8x8xf32>
    %49 = tpu.matmul %48, %33, %cst_41 {dimension_numbers = #tpu.dot_dimension_numbers<[2], [1], [1], [2], [0, 0, 0, 1, 1, 2], [0], [0]>} : vector<4x8x8xf32>, vector<4x8x8xf32>, vector<4x8x8xf32> -> vector<4x8x8xf32>
    %cst_42 = arith.constant dense<0.000000e+00> : vector<4x8x32xf32>
    %50 = tpu.matmul %49, %17, %cst_42 {dimension_numbers = #tpu.dot_dimension_numbers<[2], [1], [1], [2], [0, 0, 0, 1, 1, 2], [0], [0]>} : vector<4x8x8xf32>, vector<4x8x32xf32>, vector<4x8x32xf32> -> vector<4x8x32xf32>
    %cst_43 = arith.constant dense<0.000000e+00> : vector<8x32xf32>
    %51 = vector.multi_reduction <add>, %50, %cst_43 [0] : vector<4x8x32xf32> to vector<8x32xf32>
    %52 = vector.broadcast %19 : vector<1x32xf32> to vector<8x32xf32>
    %53 = arith.addf %51, %52 : vector<8x32xf32>
    %54 = arith.addf %3, %53 : vector<8x32xf32>
    %c0_44 = arith.constant 0 : index
    %c0_45 = arith.constant 0 : index
    %c0_46 = arith.constant 0 : index
    %55 = vector.load %arg16[%c0_44, %c0_45, %c0_46] : memref<1x1x32xf32, #tpu.memory_space<vmem>>, vector<1x1x32xf32>
    %56 = vector.shape_cast %55 : vector<1x1x32xf32> to vector<1x32xf32>
    %c0_47 = arith.constant 0 : index
    %c0_48 = arith.constant 0 : index
    %c0_49 = arith.constant 0 : index
    %57 = vector.load %arg17[%c0_47, %c0_48, %c0_49] : memref<1x1x32xf32, #tpu.memory_space<vmem>>, vector<1x1x32xf32>
    %58 = vector.shape_cast %57 : vector<1x1x32xf32> to vector<1x32xf32>
    %cst_50 = arith.constant dense<0.000000e+00> : vector<8xf32>
    %59 = vector.multi_reduction <add>, %54, %cst_50 [1] : vector<8x32xf32> to vector<8xf32>
    %60 = vector.shape_cast %59 : vector<8xf32> to vector<8x1xf32>
    %cst_51 = arith.constant 3.200000e+01 : f32
    %61 = vector.broadcast %cst_51 : f32 to vector<8x1xf32>
    %62 = arith.divf %60, %61 : vector<8x1xf32>
    %63 = vector.broadcast %62 : vector<8x1xf32> to vector<8x32xf32>
    %64 = arith.subf %54, %63 : vector<8x32xf32>
    %65 = arith.mulf %64, %64 : vector<8x32xf32>
    %cst_52 = arith.constant dense<0.000000e+00> : vector<8xf32>
    %66 = vector.multi_reduction <add>, %65, %cst_52 [1] : vector<8x32xf32> to vector<8xf32>
    %67 = vector.shape_cast %66 : vector<8xf32> to vector<8x1xf32>
    %cst_53 = arith.constant 3.200000e+01 : f32
    %68 = vector.broadcast %cst_53 : f32 to vector<8x1xf32>
    %69 = arith.divf %67, %68 : vector<8x1xf32>
    %70 = vector.broadcast %62 : vector<8x1xf32> to vector<8x32xf32>
    %71 = arith.subf %54, %70 : vector<8x32xf32>
    %cst_54 = arith.constant 9.99999974E-6 : f32
    %72 = vector.broadcast %cst_54 : f32 to vector<8x1xf32>
    %73 = arith.addf %69, %72 : vector<8x1xf32>
    %74 = math.rsqrt %73 : vector<8x1xf32>
    %75 = vector.broadcast %74 : vector<8x1xf32> to vector<8x32xf32>
    %76 = arith.mulf %71, %75 : vector<8x32xf32>
    %77 = vector.broadcast %56 : vector<1x32xf32> to vector<8x32xf32>
    %78 = arith.mulf %76, %77 : vector<8x32xf32>
    %79 = vector.broadcast %58 : vector<1x32xf32> to vector<8x32xf32>
    %80 = arith.addf %78, %79 : vector<8x32xf32>
    %c0_55 = arith.constant 0 : index
    %c0_56 = arith.constant 0 : index
    %c0_57 = arith.constant 0 : index
    %81 = vector.load %arg3[%c0_55, %c0_56, %c0_57] : memref<1x8x32xf32, #tpu.memory_space<vmem>>, vector<1x8x32xf32>
    %82 = vector.shape_cast %81 : vector<1x8x32xf32> to vector<8x32xf32>
    %c0_58 = arith.constant 0 : index
    %c0_59 = arith.constant 0 : index
    %c0_60 = arith.constant 0 : index
    %c0_61 = arith.constant 0 : index
    %83 = vector.load %arg18[%c0_58, %c0_59, %c0_60, %c0_61] : memref<1x4x32x8xf32, #tpu.memory_space<vmem>>, vector<1x4x32x8xf32>
    %84 = vector.shape_cast %83 : vector<1x4x32x8xf32> to vector<4x32x8xf32>
    %c0_62 = arith.constant 0 : index
    %c0_63 = arith.constant 0 : index
    %c0_64 = arith.constant 0 : index
    %c0_65 = arith.constant 0 : index
    %85 = vector.load %arg19[%c0_62, %c0_63, %c0_64, %c0_65] : memref<1x4x32x8xf32, #tpu.memory_space<vmem>>, vector<1x4x32x8xf32>
    %86 = vector.shape_cast %85 : vector<1x4x32x8xf32> to vector<4x32x8xf32>
    %c0_66 = arith.constant 0 : index
    %c0_67 = arith.constant 0 : index
    %c0_68 = arith.constant 0 : index
    %c0_69 = arith.constant 0 : index
    %87 = vector.load %arg20[%c0_66, %c0_67, %c0_68, %c0_69] : memref<1x4x32x8xf32, #tpu.memory_space<vmem>>, vector<1x4x32x8xf32>
    %88 = vector.shape_cast %87 : vector<1x4x32x8xf32> to vector<4x32x8xf32>
    %c0_70 = arith.constant 0 : index
    %c0_71 = arith.constant 0 : index
    %c0_72 = arith.constant 0 : index
    %c0_73 = arith.constant 0 : index
    %89 = vector.load %arg21[%c0_70, %c0_71, %c0_72, %c0_73] : memref<1x4x1x8xf32, #tpu.memory_space<vmem>>, vector<1x4x1x8xf32>
    %90 = vector.shape_cast %89 : vector<1x4x1x8xf32> to vector<4x1x8xf32>
    %c0_74 = arith.constant 0 : index
    %c0_75 = arith.constant 0 : index
    %c0_76 = arith.constant 0 : index
    %c0_77 = arith.constant 0 : index
    %91 = vector.load %arg22[%c0_74, %c0_75, %c0_76, %c0_77] : memref<1x4x1x8xf32, #tpu.memory_space<vmem>>, vector<1x4x1x8xf32>
    %92 = vector.shape_cast %91 : vector<1x4x1x8xf32> to vector<4x1x8xf32>
    %c0_78 = arith.constant 0 : index
    %c0_79 = arith.constant 0 : index
    %c0_80 = arith.constant 0 : index
    %c0_81 = arith.constant 0 : index
    %93 = vector.load %arg23[%c0_78, %c0_79, %c0_80, %c0_81] : memref<1x4x1x8xf32, #tpu.memory_space<vmem>>, vector<1x4x1x8xf32>
    %94 = vector.shape_cast %93 : vector<1x4x1x8xf32> to vector<4x1x8xf32>
    %c0_82 = arith.constant 0 : index
    %c0_83 = arith.constant 0 : index
    %c0_84 = arith.constant 0 : index
    %c0_85 = arith.constant 0 : index
    %95 = vector.load %arg24[%c0_82, %c0_83, %c0_84, %c0_85] : memref<1x4x8x32xf32, #tpu.memory_space<vmem>>, vector<1x4x8x32xf32>
    %96 = vector.shape_cast %95 : vector<1x4x8x32xf32> to vector<4x8x32xf32>
    %c0_86 = arith.constant 0 : index
    %c0_87 = arith.constant 0 : index
    %c0_88 = arith.constant 0 : index
    %97 = vector.load %arg25[%c0_86, %c0_87, %c0_88] : memref<1x1x32xf32, #tpu.memory_space<vmem>>, vector<1x1x32xf32>
    %98 = vector.shape_cast %97 : vector<1x1x32xf32> to vector<1x32xf32>
    %99 = vector.shape_cast %80 : vector<8x32xf32> to vector<1x8x32xf32>
    %100 = vector.broadcast %99 : vector<1x8x32xf32> to vector<4x8x32xf32>
    %101 = vector.shape_cast %82 : vector<8x32xf32> to vector<1x8x32xf32>
    %102 = vector.broadcast %101 : vector<1x8x32xf32> to vector<4x8x32xf32>
    %cst_89 = arith.constant dense<0.000000e+00> : vector<4x8x8xf32>
    %103 = tpu.matmul %100, %84, %cst_89 {dimension_numbers = #tpu.dot_dimension_numbers<[2], [1], [1], [2], [0, 0, 0, 1, 1, 2], [0], [0]>} : vector<4x8x32xf32>, vector<4x32x8xf32>, vector<4x8x8xf32> -> vector<4x8x8xf32>
    %104 = vector.broadcast %90 : vector<4x1x8xf32> to vector<4x8x8xf32>
    %105 = arith.addf %103, %104 : vector<4x8x8xf32>
    %cst_90 = arith.constant dense<0.000000e+00> : vector<4x8x8xf32>
    %106 = tpu.matmul %102, %86, %cst_90 {dimension_numbers = #tpu.dot_dimension_numbers<[2], [1], [1], [2], [0, 0, 0, 1, 1, 2], [0], [0]>} : vector<4x8x32xf32>, vector<4x32x8xf32>, vector<4x8x8xf32> -> vector<4x8x8xf32>
    %107 = vector.broadcast %92 : vector<4x1x8xf32> to vector<4x8x8xf32>
    %108 = arith.addf %106, %107 : vector<4x8x8xf32>
    %cst_91 = arith.constant dense<0.000000e+00> : vector<4x8x8xf32>
    %109 = tpu.matmul %102, %88, %cst_91 {dimension_numbers = #tpu.dot_dimension_numbers<[2], [1], [1], [2], [0, 0, 0, 1, 1, 2], [0], [0]>} : vector<4x8x32xf32>, vector<4x32x8xf32>, vector<4x8x8xf32> -> vector<4x8x8xf32>
    %110 = vector.broadcast %94 : vector<4x1x8xf32> to vector<4x8x8xf32>
    %111 = arith.addf %109, %110 : vector<4x8x8xf32>
    %cst_92 = arith.constant dense<0.000000e+00> : vector<4x8x8xf32>
    %112 = tpu.matmul %105, %108, %cst_92 {dimension_numbers = #tpu.dot_dimension_numbers<[2], [2], [1], [1], [0, 0, 0, 1, 1, 1], [0], [0]>} : vector<4x8x8xf32>, vector<4x8x8xf32>, vector<4x8x8xf32> -> vector<4x8x8xf32>
    %cst_93 = arith.constant 0.353553385 : f32
    %113 = vector.broadcast %cst_93 : f32 to vector<4x8x8xf32>
    %114 = arith.mulf %112, %113 : vector<4x8x8xf32>
    %cst_94 = arith.constant dense<0xFF800000> : vector<4x8xf32>
    %115 = vector.multi_reduction <maximumf>, %114, %cst_94 [2] : vector<4x8x8xf32> to vector<4x8xf32>
    %116 = vector.shape_cast %115 : vector<4x8xf32> to vector<4x8x1xf32>
    %117 = vector.broadcast %116 : vector<4x8x1xf32> to vector<4x8x8xf32>
    %118 = arith.subf %114, %117 : vector<4x8x8xf32>
    %119 = math.exp %118 : vector<4x8x8xf32>
    %cst_95 = arith.constant dense<0.000000e+00> : vector<4x8xf32>
    %120 = vector.multi_reduction <add>, %119, %cst_95 [2] : vector<4x8x8xf32> to vector<4x8xf32>
    %121 = vector.shape_cast %120 : vector<4x8xf32> to vector<4x8x1xf32>
    %122 = vector.broadcast %121 : vector<4x8x1xf32> to vector<4x8x8xf32>
    %123 = arith.divf %119, %122 : vector<4x8x8xf32>
    %cst_96 = arith.constant dense<0.000000e+00> : vector<4x8x8xf32>
    %124 = tpu.matmul %123, %111, %cst_96 {dimension_numbers = #tpu.dot_dimension_numbers<[2], [1], [1], [2], [0, 0, 0, 1, 1, 2], [0], [0]>} : vector<4x8x8xf32>, vector<4x8x8xf32>, vector<4x8x8xf32> -> vector<4x8x8xf32>
    %cst_97 = arith.constant dense<0.000000e+00> : vector<4x8x32xf32>
    %125 = tpu.matmul %124, %96, %cst_97 {dimension_numbers = #tpu.dot_dimension_numbers<[2], [1], [1], [2], [0, 0, 0, 1, 1, 2], [0], [0]>} : vector<4x8x8xf32>, vector<4x8x32xf32>, vector<4x8x32xf32> -> vector<4x8x32xf32>
    %cst_98 = arith.constant dense<0.000000e+00> : vector<8x32xf32>
    %126 = vector.multi_reduction <add>, %125, %cst_98 [0] : vector<4x8x32xf32> to vector<8x32xf32>
    %127 = vector.broadcast %98 : vector<1x32xf32> to vector<8x32xf32>
    %128 = arith.addf %126, %127 : vector<8x32xf32>
    %129 = arith.addf %80, %128 : vector<8x32xf32>
    %c0_99 = arith.constant 0 : index
    %c0_100 = arith.constant 0 : index
    %c0_101 = arith.constant 0 : index
    %130 = vector.load %arg26[%c0_99, %c0_100, %c0_101] : memref<1x1x32xf32, #tpu.memory_space<vmem>>, vector<1x1x32xf32>
    %131 = vector.shape_cast %130 : vector<1x1x32xf32> to vector<1x32xf32>
    %c0_102 = arith.constant 0 : index
    %c0_103 = arith.constant 0 : index
    %c0_104 = arith.constant 0 : index
    %132 = vector.load %arg27[%c0_102, %c0_103, %c0_104] : memref<1x1x32xf32, #tpu.memory_space<vmem>>, vector<1x1x32xf32>
    %133 = vector.shape_cast %132 : vector<1x1x32xf32> to vector<1x32xf32>
    %cst_105 = arith.constant dense<0.000000e+00> : vector<8xf32>
    %134 = vector.multi_reduction <add>, %129, %cst_105 [1] : vector<8x32xf32> to vector<8xf32>
    %135 = vector.shape_cast %134 : vector<8xf32> to vector<8x1xf32>
    %cst_106 = arith.constant 3.200000e+01 : f32
    %136 = vector.broadcast %cst_106 : f32 to vector<8x1xf32>
    %137 = arith.divf %135, %136 : vector<8x1xf32>
    %138 = vector.broadcast %137 : vector<8x1xf32> to vector<8x32xf32>
    %139 = arith.subf %129, %138 : vector<8x32xf32>
    %140 = arith.mulf %139, %139 : vector<8x32xf32>
    %cst_107 = arith.constant dense<0.000000e+00> : vector<8xf32>
    %141 = vector.multi_reduction <add>, %140, %cst_107 [1] : vector<8x32xf32> to vector<8xf32>
    %142 = vector.shape_cast %141 : vector<8xf32> to vector<8x1xf32>
    %cst_108 = arith.constant 3.200000e+01 : f32
    %143 = vector.broadcast %cst_108 : f32 to vector<8x1xf32>
    %144 = arith.divf %142, %143 : vector<8x1xf32>
    %145 = vector.broadcast %137 : vector<8x1xf32> to vector<8x32xf32>
    %146 = arith.subf %129, %145 : vector<8x32xf32>
    %cst_109 = arith.constant 9.99999974E-6 : f32
    %147 = vector.broadcast %cst_109 : f32 to vector<8x1xf32>
    %148 = arith.addf %144, %147 : vector<8x1xf32>
    %149 = math.rsqrt %148 : vector<8x1xf32>
    %150 = vector.broadcast %149 : vector<8x1xf32> to vector<8x32xf32>
    %151 = arith.mulf %146, %150 : vector<8x32xf32>
    %152 = vector.broadcast %131 : vector<1x32xf32> to vector<8x32xf32>
    %153 = arith.mulf %151, %152 : vector<8x32xf32>
    %154 = vector.broadcast %133 : vector<1x32xf32> to vector<8x32xf32>
    %155 = arith.addf %153, %154 : vector<8x32xf32>
    %c0_110 = arith.constant 0 : index
    %c0_111 = arith.constant 0 : index
    %c0_112 = arith.constant 0 : index
    %156 = vector.load %arg28[%c0_110, %c0_111, %c0_112] : memref<1x32x128xf32, #tpu.memory_space<vmem>>, vector<1x32x128xf32>
    %157 = vector.shape_cast %156 : vector<1x32x128xf32> to vector<32x128xf32>
    %cst_113 = arith.constant dense<0.000000e+00> : vector<8x128xf32>
    %158 = tpu.matmul %155, %157, %cst_113 {dimension_numbers = #tpu.dot_dimension_numbers<[1], [0], [0], [1], [0, 0, 1, 1], [], []>} : vector<8x32xf32>, vector<32x128xf32>, vector<8x128xf32> -> vector<8x128xf32>
    %c0_114 = arith.constant 0 : index
    %c0_115 = arith.constant 0 : index
    %c0_116 = arith.constant 0 : index
    %159 = vector.load %arg29[%c0_114, %c0_115, %c0_116] : memref<1x1x128xf32, #tpu.memory_space<vmem>>, vector<1x1x128xf32>
    %160 = vector.shape_cast %159 : vector<1x1x128xf32> to vector<1x128xf32>
    %161 = vector.broadcast %160 : vector<1x128xf32> to vector<8x128xf32>
    %162 = arith.addf %158, %161 : vector<8x128xf32>
    %cst_117 = arith.constant 0.000000e+00 : f32
    %163 = vector.broadcast %cst_117 : f32 to vector<8x128xf32>
    %164 = arith.maximumf %162, %163 : vector<8x128xf32>
    %c0_118 = arith.constant 0 : index
    %c0_119 = arith.constant 0 : index
    %c0_120 = arith.constant 0 : index
    %165 = vector.load %arg30[%c0_118, %c0_119, %c0_120] : memref<1x128x32xf32, #tpu.memory_space<vmem>>, vector<1x128x32xf32>
    %166 = vector.shape_cast %165 : vector<1x128x32xf32> to vector<128x32xf32>
    %cst_121 = arith.constant dense<0.000000e+00> : vector<8x32xf32>
    %167 = tpu.matmul %164, %166, %cst_121 {dimension_numbers = #tpu.dot_dimension_numbers<[1], [0], [0], [1], [0, 0, 1, 1], [], []>} : vector<8x128xf32>, vector<128x32xf32>, vector<8x32xf32> -> vector<8x32xf32>
    %168 = arith.addf %155, %167 : vector<8x32xf32>
    %c0_122 = arith.constant 0 : index
    %c0_123 = arith.constant 0 : index
    %c0_124 = arith.constant 0 : index
    %169 = vector.load %arg31[%c0_122, %c0_123, %c0_124] : memref<1x1x32xf32, #tpu.memory_space<vmem>>, vector<1x1x32xf32>
    %170 = vector.shape_cast %169 : vector<1x1x32xf32> to vector<1x32xf32>
    %171 = vector.broadcast %170 : vector<1x32xf32> to vector<8x32xf32>
    %172 = arith.addf %168, %171 : vector<8x32xf32>
    %c0_125 = arith.constant 0 : index
    %c0_126 = arith.constant 0 : index
    %c0_127 = arith.constant 0 : index
    %173 = vector.load %arg32[%c0_125, %c0_126, %c0_127] : memref<1x1x32xf32, #tpu.memory_space<vmem>>, vector<1x1x32xf32>
    %174 = vector.shape_cast %173 : vector<1x1x32xf32> to vector<1x32xf32>
    %c0_128 = arith.constant 0 : index
    %c0_129 = arith.constant 0 : index
    %c0_130 = arith.constant 0 : index
    %175 = vector.load %arg33[%c0_128, %c0_129, %c0_130] : memref<1x1x32xf32, #tpu.memory_space<vmem>>, vector<1x1x32xf32>
    %176 = vector.shape_cast %175 : vector<1x1x32xf32> to vector<1x32xf32>
    %cst_131 = arith.constant dense<0.000000e+00> : vector<8xf32>
    %177 = vector.multi_reduction <add>, %172, %cst_131 [1] : vector<8x32xf32> to vector<8xf32>
    %178 = vector.shape_cast %177 : vector<8xf32> to vector<8x1xf32>
    %cst_132 = arith.constant 3.200000e+01 : f32
    %179 = vector.broadcast %cst_132 : f32 to vector<8x1xf32>
    %180 = arith.divf %178, %179 : vector<8x1xf32>
    %181 = vector.broadcast %180 : vector<8x1xf32> to vector<8x32xf32>
    %182 = arith.subf %172, %181 : vector<8x32xf32>
    %183 = arith.mulf %182, %182 : vector<8x32xf32>
    %cst_133 = arith.constant dense<0.000000e+00> : vector<8xf32>
    %184 = vector.multi_reduction <add>, %183, %cst_133 [1] : vector<8x32xf32> to vector<8xf32>
    %185 = vector.shape_cast %184 : vector<8xf32> to vector<8x1xf32>
    %cst_134 = arith.constant 3.200000e+01 : f32
    %186 = vector.broadcast %cst_134 : f32 to vector<8x1xf32>
    %187 = arith.divf %185, %186 : vector<8x1xf32>
    %188 = vector.broadcast %180 : vector<8x1xf32> to vector<8x32xf32>
    %189 = arith.subf %172, %188 : vector<8x32xf32>
    %cst_135 = arith.constant 9.99999974E-6 : f32
    %190 = vector.broadcast %cst_135 : f32 to vector<8x1xf32>
    %191 = arith.addf %187, %190 : vector<8x1xf32>
    %192 = math.rsqrt %191 : vector<8x1xf32>
    %193 = vector.broadcast %192 : vector<8x1xf32> to vector<8x32xf32>
    %194 = arith.mulf %189, %193 : vector<8x32xf32>
    %195 = vector.broadcast %174 : vector<1x32xf32> to vector<8x32xf32>
    %196 = arith.mulf %194, %195 : vector<8x32xf32>
    %197 = vector.broadcast %176 : vector<1x32xf32> to vector<8x32xf32>
    %198 = arith.addf %196, %197 : vector<8x32xf32>
    %c0_136 = arith.constant 0 : index
    %c0_137 = arith.constant 0 : index
    %c0_138 = arith.constant 0 : index
    %199 = vector.load %arg4[%c0_136, %c0_137, %c0_138] : memref<1x8x1xf32, #tpu.memory_space<vmem>>, vector<1x8x1xf32>
    %200 = vector.shape_cast %199 : vector<1x8x1xf32> to vector<8x1xf32>
    %201 = vector.broadcast %200 : vector<8x1xf32> to vector<8x32xf32>
    %202 = arith.mulf %198, %201 : vector<8x32xf32>
    %c0_139 = arith.constant 0 : index
    %c0_140 = arith.constant 0 : index
    %203 = vector.load %arg35[%c0_139, %c0_140] : memref<8x32xf32, #tpu.memory_space<vmem>>, vector<8x32xf32>
    tpu.vector_store %arg35[%c0_139, %c0_140], %202 {strides = array<i32>} : memref<8x32xf32, #tpu.memory_space<vmem>>, vector<8x32xf32>,
    %c1_i32 = arith.constant 1 : i32
    %204 = arith.cmpi eq, %arg1, %c1_i32 : i32
    %205 = arith.extui %204 : i1 to i32
    %c0_i32_141 = arith.constant 0 : i32
    %206 = arith.cmpi ne, %205, %c0_i32_141 : i32
    scf.if %206 {
      %c0_142 = arith.constant 0 : index
      %c0_143 = arith.constant 0 : index
      %207 = vector.load %arg6[%c0_142, %c0_143] : memref<32x128xf32, #tpu.memory_space<vmem>>, vector<32x128xf32>
      %cst_144 = arith.constant dense<0.000000e+00> : vector<8x128xf32>
      %208 = tpu.matmul %202, %207, %cst_144 {dimension_numbers = #tpu.dot_dimension_numbers<[1], [0], [0], [1], [0, 0, 1, 1], [], []>} : vector<8x32xf32>, vector<32x128xf32>, vector<8x128xf32> -> vector<8x128xf32>
      %c0_145 = arith.constant 0 : index
      %c0_146 = arith.constant 0 : index
      %209 = vector.load %arg7[%c0_145, %c0_146] : memref<1x128xf32, #tpu.memory_space<vmem>>, vector<1x128xf32>
      %210 = vector.broadcast %209 : vector<1x128xf32> to vector<8x128xf32>
      %211 = arith.addf %208, %210 : vector<8x128xf32>
      %c0_147 = arith.constant 0 : index
      %c0_148 = arith.constant 0 : index
      %c0_149 = arith.constant 0 : index
      %212 = vector.load %arg34[%c0_147, %c0_148, %c0_149] : memref<1x8x128xf32, #tpu.memory_space<vmem>>, vector<1x8x128xf32>
      %213 = vector.shape_cast %212 : vector<1x8x128xf32> to vector<8x128xf32>
      %214 = vector.shape_cast %211 : vector<8x128xf32> to vector<1x8x128xf32>
      tpu.vector_store %arg34[%c0_147, %c0_148, %c0_149], %214 {strides = array<i32>} : memref<1x8x128xf32, #tpu.memory_space<vmem>>, vector<1x8x128xf32>,
    } else {
    }
    return
  }
  func.func @transform_0(%arg0: i32, %arg1: i32) -> (i32, i32, i32) {
    %c0_i32 = arith.constant 0 : i32
    %c0_i32_0 = arith.constant 0 : i32
    %c0_i32_1 = arith.constant 0 : i32
    return %arg0, %c0_i32, %c0_i32_0 : i32, i32, i32
  }
  func.func @transform_1(%arg0: i32, %arg1: i32) -> (i32, i32, i32) {
    %c0_i32 = arith.constant 0 : i32
    %c0_i32_0 = arith.constant 0 : i32
    %c0_i32_1 = arith.constant 0 : i32
    return %arg0, %c0_i32, %c0_i32_0 : i32, i32, i32
  }
  func.func @transform_2(%arg0: i32, %arg1: i32) -> (i32, i32, i32) {
    %c0_i32 = arith.constant 0 : i32
    %c0_i32_0 = arith.constant 0 : i32
    %c0_i32_1 = arith.constant 0 : i32
    return %arg0, %c0_i32, %c0_i32_0 : i32, i32, i32
  }
  func.func @transform_3(%arg0: i32, %arg1: i32) -> (i32, i32) {
    %c0_i32 = arith.constant 0 : i32
    %c0_i32_0 = arith.constant 0 : i32
    %c0_i32_1 = arith.constant 0 : i32
    return %c0_i32, %c0_i32_0 : i32, i32
  }
  func.func @transform_4(%arg0: i32, %arg1: i32) -> (i32, i32) {
    %c0_i32 = arith.constant 0 : i32
    %c0_i32_0 = arith.constant 0 : i32
    %c0_i32_1 = arith.constant 0 : i32
    return %c0_i32, %c0_i32_0 : i32, i32
  }
  func.func @transform_5(%arg0: i32, %arg1: i32) -> (i32, i32) {
    %c0_i32 = arith.constant 0 : i32
    %c0_i32_0 = arith.constant 0 : i32
    %c0_i32_1 = arith.constant 0 : i32
    return %c0_i32, %c0_i32_0 : i32, i32
  }
  func.func @transform_6(%arg0: i32, %arg1: i32) -> (i32, i32, i32, i32) {
    %c0_i32 = arith.constant 0 : i32
    %c0_i32_0 = arith.constant 0 : i32
    %c0_i32_1 = arith.constant 0 : i32
    %c0_i32_2 = arith.constant 0 : i32
    return %arg1, %c0_i32, %c0_i32_0, %c0_i32_1 : i32, i32, i32, i32
  }
  func.func @transform_7(%arg0: i32, %arg1: i32) -> (i32, i32, i32, i32) {
    %c0_i32 = arith.constant 0 : i32
    %c0_i32_0 = arith.constant 0 : i32
    %c0_i32_1 = arith.constant 0 : i32
    %c0_i32_2 = arith.constant 0 : i32
    return %arg1, %c0_i32, %c0_i32_0, %c0_i32_1 : i32, i32, i32, i32
  }
  func.func @transform_8(%arg0: i32, %arg1: i32) -> (i32, i32, i32, i32) {
    %c0_i32 = arith.constant 0 : i32
    %c0_i32_0 = arith.constant 0 : i32
    %c0_i32_1 = arith.constant 0 : i32
    %c0_i32_2 = arith.constant 0 : i32
    return %arg1, %c0_i32, %c0_i32_0, %c0_i32_1 : i32, i32, i32, i32
  }
  func.func @transform_9(%arg0: i32, %arg1: i32) -> (i32, i32, i32, i32) {
    %c0_i32 = arith.constant 0 : i32
    %c0_i32_0 = arith.constant 0 : i32
    %c0_i32_1 = arith.constant 0 : i32
    %c0_i32_2 = arith.constant 0 : i32
    return %arg1, %c0_i32, %c0_i32_0, %c0_i32_1 : i32, i32, i32, i32
  }
  func.func @transform_10(%arg0: i32, %arg1: i32) -> (i32, i32, i32, i32) {
    %c0_i32 = arith.constant 0 : i32
    %c0_i32_0 = arith.constant 0 : i32
    %c0_i32_1 = arith.constant 0 : i32
    %c0_i32_2 = arith.constant 0 : i32
    return %arg1, %c0_i32, %c0_i32_0, %c0_i32_1 : i32, i32, i32, i32
  }
  func.func @transform_11(%arg0: i32, %arg1: i32) -> (i32, i32, i32, i32) {
    %c0_i32 = arith.constant 0 : i32
    %c0_i32_0 = arith.constant 0 : i32
    %c0_i32_1 = arith.constant 0 : i32
    %c0_i32_2 = arith.constant 0 : i32
    return %arg1, %c0_i32, %c0_i32_0, %c0_i32_1 : i32, i32, i32, i32
  }
  func.func @transform_12(%arg0: i32, %arg1: i32) -> (i32, i32, i32, i32) {
    %c0_i32 = arith.constant 0 : i32
    %c0_i32_0 = arith.constant 0 : i32
    %c0_i32_1 = arith.constant 0 : i32
    %c0_i32_2 = arith.constant 0 : i32
    return %arg1, %c0_i32, %c0_i32_0, %c0_i32_1 : i32, i32, i32, i32
  }
  func.func @transform_13(%arg0: i32, %arg1: i32) -> (i32, i32, i32) {
    %c0_i32 = arith.constant 0 : i32
    %c0_i32_0 = arith.constant 0 : i32
    %c0_i32_1 = arith.constant 0 : i32
    return %arg1, %c0_i32, %c0_i32_0 : i32, i32, i32
  }
  func.func @transform_14(%arg0: i32, %arg1: i32) -> (i32, i32, i32) {
    %c0_i32 = arith.constant 0 : i32
    %c0_i32_0 = arith.constant 0 : i32
    %c0_i32_1 = arith.constant 0 : i32
    return %arg1, %c0_i32, %c0_i32_0 : i32, i32, i32
  }
  func.func @transform_15(%arg0: i32, %arg1: i32) -> (i32, i32, i32) {
    %c0_i32 = arith.constant 0 : i32
    %c0_i32_0 = arith.constant 0 : i32
    %c0_i32_1 = arith.constant 0 : i32
    return %arg1, %c0_i32, %c0_i32_0 : i32, i32, i32
  }
  func.func @transform_16(%arg0: i32, %arg1: i32) -> (i32, i32, i32, i32) {
    %c0_i32 = arith.constant 0 : i32
    %c0_i32_0 = arith.constant 0 : i32
    %c0_i32_1 = arith.constant 0 : i32
    %c0_i32_2 = arith.constant 0 : i32
    return %arg1, %c0_i32, %c0_i32_0, %c0_i32_1 : i32, i32, i32, i32
  }
  func.func @transform_17(%arg0: i32, %arg1: i32) -> (i32, i32, i32, i32) {
    %c0_i32 = arith.constant 0 : i32
    %c0_i32_0 = arith.constant 0 : i32
    %c0_i32_1 = arith.constant 0 : i32
    %c0_i32_2 = arith.constant 0 : i32
    return %arg1, %c0_i32, %c0_i32_0, %c0_i32_1 : i32, i32, i32, i32
  }
  func.func @transform_18(%arg0: i32, %arg1: i32) -> (i32, i32, i32, i32) {
    %c0_i32 = arith.constant 0 : i32
    %c0_i32_0 = arith.constant 0 : i32
    %c0_i32_1 = arith.constant 0 : i32
    %c0_i32_2 = arith.constant 0 : i32
    return %arg1, %c0_i32, %c0_i32_0, %c0_i32_1 : i32, i32, i32, i32
  }
  func.func @transform_19(%arg0: i32, %arg1: i32) -> (i32, i32, i32, i32) {
    %c0_i32 = arith.constant 0 : i32
    %c0_i32_0 = arith.constant 0 : i32
    %c0_i32_1 = arith.constant 0 : i32
    %c0_i32_2 = arith.constant 0 : i32
    return %arg1, %c0_i32, %c0_i32_0, %c0_i32_1 : i32, i32, i32, i32
  }
  func.func @transform_20(%arg0: i32, %arg1: i32) -> (i32, i32, i32, i32) {
    %c0_i32 = arith.constant 0 : i32
    %c0_i32_0 = arith.constant 0 : i32
    %c0_i32_1 = arith.constant 0 : i32
    %c0_i32_2 = arith.constant 0 : i32
    return %arg1, %c0_i32, %c0_i32_0, %c0_i32_1 : i32, i32, i32, i32
  }
  func.func @transform_21(%arg0: i32, %arg1: i32) -> (i32, i32, i32, i32) {
    %c0_i32 = arith.constant 0 : i32
    %c0_i32_0 = arith.constant 0 : i32
    %c0_i32_1 = arith.constant 0 : i32
    %c0_i32_2 = arith.constant 0 : i32
    return %arg1, %c0_i32, %c0_i32_0, %c0_i32_1 : i32, i32, i32, i32
  }
  func.func @transform_22(%arg0: i32, %arg1: i32) -> (i32, i32, i32, i32) {
    %c0_i32 = arith.constant 0 : i32
    %c0_i32_0 = arith.constant 0 : i32
    %c0_i32_1 = arith.constant 0 : i32
    %c0_i32_2 = arith.constant 0 : i32
    return %arg1, %c0_i32, %c0_i32_0, %c0_i32_1 : i32, i32, i32, i32
  }
  func.func @transform_23(%arg0: i32, %arg1: i32) -> (i32, i32, i32) {
    %c0_i32 = arith.constant 0 : i32
    %c0_i32_0 = arith.constant 0 : i32
    %c0_i32_1 = arith.constant 0 : i32
    return %arg1, %c0_i32, %c0_i32_0 : i32, i32, i32
  }
  func.func @transform_24(%arg0: i32, %arg1: i32) -> (i32, i32, i32) {
    %c0_i32 = arith.constant 0 : i32
    %c0_i32_0 = arith.constant 0 : i32
    %c0_i32_1 = arith.constant 0 : i32
    return %arg1, %c0_i32, %c0_i32_0 : i32, i32, i32
  }
  func.func @transform_25(%arg0: i32, %arg1: i32) -> (i32, i32, i32) {
    %c0_i32 = arith.constant 0 : i32
    %c0_i32_0 = arith.constant 0 : i32
    %c0_i32_1 = arith.constant 0 : i32
    return %arg1, %c0_i32, %c0_i32_0 : i32, i32, i32
  }
  func.func @transform_26(%arg0: i32, %arg1: i32) -> (i32, i32, i32) {
    %c0_i32 = arith.constant 0 : i32
    %c0_i32_0 = arith.constant 0 : i32
    %c0_i32_1 = arith.constant 0 : i32
    return %arg1, %c0_i32, %c0_i32_0 : i32, i32, i32
  }
  func.func @transform_27(%arg0: i32, %arg1: i32) -> (i32, i32, i32) {
    %c0_i32 = arith.constant 0 : i32
    %c0_i32_0 = arith.constant 0 : i32
    %c0_i32_1 = arith.constant 0 : i32
    return %arg1, %c0_i32, %c0_i32_0 : i32, i32, i32
  }
  func.func @transform_28(%arg0: i32, %arg1: i32) -> (i32, i32, i32) {
    %c0_i32 = arith.constant 0 : i32
    %c0_i32_0 = arith.constant 0 : i32
    %c0_i32_1 = arith.constant 0 : i32
    return %arg1, %c0_i32, %c0_i32_0 : i32, i32, i32
  }
  func.func @transform_29(%arg0: i32, %arg1: i32) -> (i32, i32, i32) {
    %c0_i32 = arith.constant 0 : i32
    %c0_i32_0 = arith.constant 0 : i32
    %c0_i32_1 = arith.constant 0 : i32
    return %arg1, %c0_i32, %c0_i32_0 : i32, i32, i32
  }
  func.func @transform_30(%arg0: i32, %arg1: i32) -> (i32, i32, i32) {
    %c0_i32 = arith.constant 0 : i32
    %c0_i32_0 = arith.constant 0 : i32
    %c0_i32_1 = arith.constant 0 : i32
    return %arg1, %c0_i32, %c0_i32_0 : i32, i32, i32
  }
  func.func @transform_31(%arg0: i32, %arg1: i32) -> (i32, i32, i32) {
    %c0_i32 = arith.constant 0 : i32
    %c0_i32_0 = arith.constant 0 : i32
    %c0_i32_1 = arith.constant 0 : i32
    return %arg1, %c0_i32, %c0_i32_0 : i32, i32, i32
  }
  func.func @transform_32(%arg0: i32, %arg1: i32) -> (i32, i32, i32) {
    %c0_i32 = arith.constant 0 : i32
    %c0_i32_0 = arith.constant 0 : i32
    %c0_i32_1 = arith.constant 0 : i32
    return %arg0, %c0_i32, %c0_i32_0 : i32, i32, i32
  }
}

</mosaic_0001>

<bundles_post_ra>
// kernel: transformer_decoder_forward.1
= control target key start
LH: loop header
LB: loop body
LE: loop exit
PB: predicated region body
PF: predicated region fallthrough
CT: control target
= control target key end

     0   :  { %s7343_s6 = smov 1   ;;  %s7344_s10 = smov 2   ;;  %s8274_s0 = inlined_call_operand.smem [shape: u32[33], index: -1, kind: input, shape index: {}] }
   0x1   :  { %s7391_s5 = sld [smem:[%s8274_s0]]   ;;  %s7345_s14 = smov 3  }
   0x2   :  { %s7396_s9 = sld [smem:[%s8274_s0 + %s7343_s6]]   ;;  %s7346_s18 = smov 4  }
   0x3   :  { %s7401_s13 = sld [smem:[%s8274_s0 + %s7344_s10]]   ;;  %s7347_s22 = smov 5  }
   0x4   :  { %s7406_s17 = sld [smem:[%s8274_s0 + %s7345_s14]]   ;;  %s7348_s26 = smov 6  }
   0x5   :  { %s7411_s21 = sld [smem:[%s8274_s0 + %s7346_s18]]   ;;  %s7349_s30 = smov 7  }
   0x6   :  { %s7416_s25 = sld [smem:[%s8274_s0 + %s7347_s22]]   ;;  %s7350_s4 = smov 8  }
   0x7   :  { %8304 = sst [smem:[#allocation6_spill]] %s7391_s5  ;;  %s7351_s10 = smov 9  }
   0x8   :  { %8305 = sst [smem:[#allocation7_spill]] %s7396_s9  ;;  %s7352_s15 = smov 10  }
   0x9   :  { %8306 = sst [smem:[#allocation8_spill]] %s7401_s13  ;;  %s7353_s20 = smov 11  }
   0xa   :  { %8307 = sst [smem:[#allocation9_spill]] %s7406_s17  ;;  %s7355_s1 = smov 13  }
   0xb   :  { %8308 = sst [smem:[#allocation10_spill]] %s7411_s21  ;;  %s7356_s7 = smov 14  }
   0xc   :  { %8309 = sst [smem:[#allocation11_spill]] %s7416_s25  ;;  %s7358_s22 = smov 16  }
   0xd   :  { %s7421_s29 = sld [smem:[%s8274_s0 + %s7348_s26]]   ;;  %s7354_s26 = smov 12  }
   0xe   :  { %s7426_s3 = sld [smem:[%s8274_s0 + %s7349_s30]]   ;;  %s7359_s28 = smov 17  }
   0xf   :  { %s7431_s8 = sld [smem:[%s8274_s0 + %s7350_s4]]  }
  0x10   :  { %s7436_s14 = sld [smem:[%s8274_s0 + %s7351_s10]]  }
  0x11   :  { %s7441_s19 = sld [smem:[%s8274_s0 + %s7352_s15]]   ;;  %s7357_s15 = smov 15  }
  0x12   :  { %s7446_s24 = sld [smem:[%s8274_s0 + %s7353_s20]]  }
  0x13   :  { %8310 = sst [smem:[#allocation12_spill]] %s7421_s29 }
  0x14   :  { %8311 = sst [smem:[#allocation13_spill]] %s7426_s3 }
  0x15   :  { %8312 = sst [smem:[#allocation14_spill]] %s7431_s8 }
  0x16   :  { %8313 = sst [smem:[#allocation15_spill]] %s7436_s14 }
  0x17   :  { %8314 = sst [smem:[#allocation16_spill]] %s7441_s19 }
  0x18   :  { %8315 = sst [smem:[#allocation17_spill]] %s7446_s24 }
  0x19   :  { %s7451_s30 = sld [smem:[%s8274_s0 + %s7354_s26]]  }
  0x1a   :  { %s7456_s6 = sld [smem:[%s8274_s0 + %s7355_s1]]  }
  0x1b   :  { %s7461_s12 = sld [smem:[%s8274_s0 + %s7356_s7]]   ;;  %s7360_s7 = smov 18  }
  0x1c   :  { %s7466_s20 = sld [smem:[%s8274_s0 + %s7357_s15]]   ;;  %s7361_s15 = smov 19  }
  0x1d   :  { %s7471_s27 = sld [smem:[%s8274_s0 + %s7358_s22]]   ;;  %s7362_s22 = smov 20  }
  0x1e   :  { %s7476_s4 = sld [smem:[%s8274_s0 + %s7359_s28]]   ;;  %s7363_s28 = smov 21  }
  0x1f   :  { %8316 = sst [smem:[#allocation18_spill]] %s7451_s30 }
  0x20   :  { %8317 = sst [smem:[#allocation19_spill]] %s7456_s6 }
  0x21   :  { %8318 = sst [smem:[#allocation20_spill]] %s7461_s12 }
  0x22   :  { %8319 = sst [smem:[#allocation21_spill]] %s7466_s20 }
  0x23   :  { %8320 = sst [smem:[#allocation22_spill]] %s7471_s27 }
  0x24   :  { %8321 = sst [smem:[#allocation23_spill]] %s7476_s4 }
  0x25   :  { %s7481_s25 = sld [smem:[%s8274_s0 + %s7360_s7]]   ;;  %s7364_s7 = smov 22  }
  0x26   :  { %s7486_s21 = sld [smem:[%s8274_s0 + %s7361_s15]]   ;;  %s7365_s15 = smov 23  }
  0x27   :  { %s7491_s17 = sld [smem:[%s8274_s0 + %s7362_s22]]   ;;  %s7366_s22 = smov 24  }
  0x28   :  { %s7496_s4 = sld [smem:[%s8274_s0 + %s7363_s28]]   ;;  %s7367_s28 = smov 25  }
  0x2b   :  { %8322 = sst [smem:[#allocation24_spill]] %s7481_s25 }
  0x2c   :  { %8323 = sst [smem:[#allocation25_spill]] %s7486_s21 }
  0x2d   :  { %8324 = sst [smem:[#allocation26_spill]] %s7491_s17 }
  0x2e   :  { %8325 = sst [smem:[#allocation27_spill]] %s7496_s4 }
  0x2f   :  { %s7501_s25 = sld [smem:[%s8274_s0 + %s7364_s7]]   ;;  %s7368_s7 = smov 26  }
  0x30   :  { %s7506_s21 = sld [smem:[%s8274_s0 + %s7365_s15]]   ;;  %s7369_s15 = smov 27  }
  0x31   :  { %s7511_s17 = sld [smem:[%s8274_s0 + %s7366_s22]]   ;;  %s7370_s22 = smov 28  }
  0x32   :  { %s7516_s4 = sld [smem:[%s8274_s0 + %s7367_s28]]   ;;  %s7371_s28 = smov 29  }
  0x35   :  { %8326 = sst [smem:[#allocation28_spill]] %s7501_s25 }
  0x36   :  { %8327 = sst [smem:[#allocation29_spill]] %s7506_s21 }
  0x37   :  { %8328 = sst [smem:[#allocation30_spill]] %s7511_s17 }
  0x38   :  { %8329 = sst [smem:[#allocation31_spill]] %s7516_s4 }
  0x39   :  { %s7521_s25 = sld [smem:[%s8274_s0 + %s7368_s7]]   ;;  %s7372_s7 = smov 30  }
  0x3a   :  { %s7526_s21 = sld [smem:[%s8274_s0 + %s7369_s15]]   ;;  %s7373_s15 = smov 31  }
  0x3b   :  { %s7531_s17 = sld [smem:[%s8274_s0 + %s7370_s22]]   ;;  %s7374_s22 = smov 32  }
  0x3c   :  { %s7536_s4 = sld [smem:[%s8274_s0 + %s7371_s28]]  }
  0x3f   :  { %8330 = sst [smem:[#allocation32_spill]] %s7521_s25 }
  0x40   :  { %8331 = sst [smem:[#allocation33_spill]] %s7526_s21 }
  0x41   :  { %8332 = sst [smem:[#allocation34_spill]] %s7531_s17 }
  0x42   :  { %8333 = sst [smem:[#allocation35_spill]] %s7536_s4 }
  0x43   :  { %s7541_s25 = sld [smem:[%s8274_s0 + %s7372_s7]]  }
  0x44   :  { %s7546_s21 = sld [smem:[%s8274_s0 + %s7373_s15]]  }
  0x45   :  { %s7551_s17 = sld [smem:[%s8274_s0 + %s7374_s22]]  }
  0x49   :  { %8334 = sst [smem:[#allocation36_spill]] %s7541_s25 }
  0x4a   :  { %8335 = sst [smem:[#allocation37_spill]] %s7546_s21 }
  0x4b   :  { %8336 = sst [smem:[#allocation38_spill]] %s7551_s17 }
  0x4c   :  { %70 = vsyncpa [#allocation4], 0 }
  0x4d   :  { %72 = vsyncpa [#allocation4 + $0x1], 0  ;;  %s7553_s28 = smov 0   ;;  %s7555_s1 = smov 0  }
  0x4e   :  { %s7557_s2 = smov 0   ;;  %s7559_s7 = smov 0  }
  0x4f   :  { %s7561_s10 = smov 0   ;;  %s7563_s11 = smov 0  }
  0x50   :  { %s7565_s15 = smov 0   ;;  %s7567_s16 = smov 0  }
  0x51 LB: > { %8337 = sst [smem:[#allocation39_spill]] %s7313_s28  ;;  %s6138_s0 = sadd.s32 4294967295, %s7341_s16   ;;  %s7341_s16 = sphi %s7567_s16, %s78_s16   ;;  %s7337_s15 = sphi %s7565_s15, %s8450_s15   ;;  %s7333_s11 = sphi %s7563_s11, %s8449_s11   ;;  %s7329_s10 = sphi %s7561_s10, %s8448_s10   ;;  %s7325_s7 = sphi %s7559_s7, %s8447_s7   ;;  %s7321_s2 = sphi %s7557_s2, %s8446_s2   ;;  %s7317_s1 = sphi %s7555_s1, %s8445_s1   ;;  %s7313_s28 = sphi %s7553_s28, %s8444_s28  }
  0x52   : > { %8338 = sst [smem:[#allocation40_spill]] %s7317_s1  ;;  %s6139_s18 = sadd.s32 4294967294, %s7341_s16  }
  0x53   : > { %8339 = sst [smem:[#allocation41_spill]] %s7321_s2  ;;  %s87_s22 = sadd.s32 1, %s7333_s11 }
  0x54   : > { %8340 = sst [smem:[#allocation42_spill]] %s7325_s7  ;;  %p88_p0 = scmp.ge.s32.totalorder %s87_s22, 2 }
  0x55   : > { %8341 = sst [smem:[#allocation43_spill]] %s7329_s10  ;;  %s90_s23 = sadd.s32 1, %s7337_s15 }
  0x56   : > { %8342 = sst [smem:[#allocation44_spill]] %s7333_s11  ;;  %p924_p1 = scmp.ne.s32.totalorder %s7321_s2, %s7317_s1 }
  0x57   : > { %8343 = sst [smem:[#allocation45_spill]] %s7337_s15  ;;  %p925_p2 = scmp.eq.s32.totalorder %s6138_s0, 3 }
  0x58   : > { %8344 = sst [smem:[#allocation46_spill]] %s7341_s16  ;;  %s8452_s22 = smov (%p88_p0, %s87_s22), 0 }
  0x59   : > { %8345 = sst [smem:[#allocation47_spill]] %s8452_s22  ;;  %s8454_s23 = smov (!%p88_p0, %s90_s23), %s7337_s15 }
  0x5a   : > { %p7602_p3 = por %p925_p2, %p924_p1  ;;  %p930_p4 = scmp.ne.s32.totalorder %s7317_s1, %s7313_s28 }
  0x5b   : > { %p92_p5 = scmp.ge.s32.totalorder %s8454_s23, 2  ;;  %p931_p6 = scmp.eq.s32.totalorder %s6139_s18, 3 }
  0x5c   : > { %s8346_s26 = scalar_select %p7602_p3, 1, 0 }
  0x5d   : > { %p6142_p7 = scmp.ge.s32.totalorder %s7341_s16, 1  ;;  %p1161_p8 = scmp.lt.s32.totalorder %s7341_s16, 5 }
  0x5e   : > { %8347 = sst [smem:[#allocation48_spill]] %s8346_s26  ;;  %s8456_s23 = smov (%p92_p5, %s8454_s23), 0 }
  0x5f   : > { %8348 = sst [smem:[#allocation49_spill]] %s8456_s23  ;;  %p7612_p9 = por %p931_p6, %p930_p4 }
  0x60   : > { %p1162_p10 = pnand %p6142_p7, %p1161_p8  ;;  %s911_s0 = ssub.s32 %s7337_s15, %s8456_s23 }
  0x61   : > { %s8349_s11 = scalar_select %p7612_p9, 1, 0 }
  0x62   : > { %s914_s22 = sadd.s32 1, %s7321_s2  ;;  %p912_p11 = scmp.eq.s32.totalorder %s911_s0, 0 }
  0x63   : > { %8350 = sst [smem:[#allocation50_spill]] %s8349_s11  ;;  %1165 = sbr.rel (%p1162_p10) target bundleno = 4205 (0x106d), region = 148 }
  0x64   : > { %s7620_s17 = scalar_select %p912_p11, %s7321_s2, %s914_s22  }
  0x66   : > { %8351 = sst [smem:[#allocation51_spill]] %s7620_s17 }
  0x6a   : > { %s8355_s29 = sld [smem:[#allocation12_spill]]  ;;  %s8356_s3 = sld [smem:[#allocation13_spill]] }
  0x6b   : > { %s8357_s8 = sld [smem:[#allocation14_spill]]  ;;  %s8358_s14 = sld [smem:[#allocation15_spill]] }
  0x6c   : > { %s8280_s18 = sand.u32 1, %s7317_s1   ;;  %s8359_s19 = sld [smem:[#allocation16_spill]] }
  0x6d   : > { %p1354_p12 = scmp.lt.s32.totalorder %s7329_s10, 1  ;;  %s8360_s24 = sld [smem:[#allocation17_spill]] }
  0x6e   : > { %s7626_s22 = sshll.u32 %s8280_s18, 3  ;;  %p1366_p13 = scmp.lt.s32.totalorder %s7325_s7, 1 }
  0x6f   : > { %8361 = sst [smem:[#allocation52_spill]] %s7626_s22  ;;  %s8362_s30 = sld [smem:[#allocation18_spill]] }
  0x70   : > { %s1355_s0 = scalar_select %p1354_p12, %s7329_s10, 1 }
  0x71   : > { %s7631_s23 = scalar_select %p1366_p13, %s7325_s7, 1 }
  0x72   : > { %s7633_s15 = sshll.u32 %s1355_s0, 3  ;;  %s8367_s27 = sld [smem:[#allocation22_spill]] }
  0x73   : > { %8365 = sst [smem:[#allocation53_spill]] %s7633_s15  ;;  %s8368_s2 = sld [smem:[#allocation23_spill]] }
  0x74   : > { %s8369_s28 = sld [smem:[#allocation24_spill]]  ;;  %s6272_s16 = sshll.u32 %s7631_s23, 7 }
  0x75   : > { %s8370_s26 = sld [smem:[#allocation25_spill]]  ;;  %s7643_s1 = scalar_lea.vmem %s8355_s29, %s6272_s16 }
  0x76   : > { %8371 = sst [smem:[#allocation54_spill]] %s7643_s1  ;;  %s8372_s10 = sld [smem:[#allocation26_spill]] }
  0x77   : > { %s7646_s7 = scalar_lea.vmem %s8356_s3, %s6272_s16  ;;  %s8374_s0 = sld [smem:[#allocation27_spill]] }
  0x78   : > { %8373 = sst [smem:[#allocation55_spill]] %s7646_s7  ;;  %s7649_s22 = scalar_lea.vmem %s8357_s8, %s6272_s16 }
  0x79   : > { %8375 = sst [smem:[#allocation56_spill]] %s7649_s22  ;;  %s8376_s21 = sld [smem:[#allocation28_spill]] }
  0x7a   : > { %s6153_s25 = sshll.u32 %s7631_s23, 2  ;;  %s8377_s4 = sld [smem:[#allocation29_spill]] }
  0x7b   : > { %s7653_s18 = scalar_lea.vmem %s8358_s14, %s6153_s25  ;;  %s8379_s17 = sld [smem:[#allocation30_spill]] }
  0x7c   : > { %8378 = sst [smem:[#allocation57_spill]] %s7653_s18  ;;  %s7656_s11 = scalar_lea.vmem %s8359_s19, %s6153_s25 }
  0x7d   : > { %8380 = sst [smem:[#allocation58_spill]] %s7656_s11  ;;  %s8381_s13 = sld [smem:[#allocation31_spill]] }
  0x7e   : > { %s7659_s29 = scalar_lea.vmem %s8360_s24, %s6153_s25  ;;  %s8383_s9 = sld [smem:[#allocation32_spill]] }
  0x7f   : > { %8382 = sst [smem:[#allocation59_spill]] %s7659_s29  ;;  %s6275_s3 = sshll.u32 %s7631_s23, 5 }
  0x80   : > { %s8384_s7 = sld [smem:[#allocation33_spill]]  ;;  %s7663_s8 = scalar_lea.vmem %s8362_s30, %s6275_s3 }
  0x81   : > { %8385 = sst [smem:[#allocation60_spill]] %s7663_s8  ;;  %s8386_s22 = sld [smem:[#allocation34_spill]] }
  0x82   : > { %s8387_s15 = sld [smem:[#allocation35_spill]]  ;;  %s8388_s18 = sld [smem:[#allocation36_spill]] }
  0x83   : > { %s8389_s19 = sld [smem:[#allocation37_spill]]  ;;  %s7672_s11 = scalar_lea.vmem %s8367_s27, %s6272_s16 }
  0x84   : > { %8390 = sst [smem:[#allocation61_spill]] %s7672_s11  ;;  %s8391_s24 = sld [smem:[#allocation52_spill]] }
  0x85   : > { %s7675_s29 = scalar_lea.vmem %s8368_s2, %s6272_s16  ;;  %s7678_s30 = scalar_lea.vmem %s8369_s28, %s6272_s16 }
  0x86   : > { %8392 = sst [smem:[#allocation62_spill]] %s7675_s29  ;;  %s7681_s8 = scalar_lea.vmem %s8370_s26, %s6153_s25 }
  0x87   : > { %8393 = sst [smem:[#allocation63_spill]] %s7678_s30  ;;  %s7684_s1 = scalar_lea.vmem %s8372_s10, %s6153_s25 }
  0x88   : > { %8394 = sst [smem:[#allocation64_spill]] %s7681_s8  ;;  %s7687_s6 = scalar_lea.vmem %s8374_s0, %s6153_s25 }
  0x89   : > { %s7690_s12 = scalar_lea.vmem %s8376_s21, %s6275_s3  ;;  %s1441_s14 = scalar_lea.vmem %s8377_s4, %s7631_s23 }
  0x8a   : > { %s1444_s5 = scalar_lea.vmem %s8379_s17, %s7631_s23  ;;  %s1447_s20 = scalar_lea.vmem %s8381_s13, %s7631_s23 }
  0x8b   : > { %s7699_s27 = scalar_lea.vmem %s8383_s9, %s6275_s3  ;;  %s1455_s11 = scalar_lea.vmem %s8384_s7, %s7631_s23 }
  0x8c   : > { %s7704_s2 = scalar_lea.vmem %s8386_s22, %s6272_s16  ;;  %s1463_s29 = scalar_lea.vmem %s8387_s15, %s7631_s23 }
  0x8d   : > { %s1466_s28 = scalar_lea.vmem %s8388_s18, %s7631_s23  ;;  %s1469_s30 = scalar_lea.vmem %s8389_s19, %s7631_s23 }
  0x8e   : > { %s1353_s26 = scalar_lea.vmem [#allocation3], %s8391_s24  ;;  %s8395_s8 = sld [smem:[#allocation42_spill]] }
  0x94   : > { %p6173_p0 = scmp.ne.s32.totalorder %s8395_s8, 0 }
  0x95   : > { %s8396_s10 = sld [smem:[#allocation6_spill]] (!%p6173_p0)  ;;  %s8397_s25 = sld [smem:[#allocation53_spill]] (!%p6173_p0)  ;;  %vm1475_vm0 = vcmask (!%p6173_p0), 261120  }
  0x96   : > { %1473 = sbr.rel (%p6173_p0) target bundleno = 158 (0x9e), region = 152 }
  0x9b   : > { %s8398_s0 = scalar_lea.vmem (!%p6173_p0), %s8396_s10, %s8397_s25 }
  0x9c   : > { %v1474_v0 = vld [vmem:[%s8398_s0] sm:$0xff] (!%p6173_p0) }
  0x9d   : > { %1476 = vst.msk [vmem:[#allocation2] sm:$0xff] %vm1475_vm0, %v1474_v0 }
  0x9e PF: > { %s8399_s13 = sld [smem:[#allocation54_spill]]  ;;  %v7375_v4 = vmov 0.0|0.0   ;;  %s8400_s9 = sld [smem:[#allocation55_spill]]  ;;  %vm7376_vm1 = vmmov 0   ;;  %v7377_v12 = vmov 0.0   ;;  %vm1568_vm2 = vcmask 261120  }
  0x9f   : > { %6918 = vmatprep.subr.bf16.mxu0 %v7375_v4  ;;  %6936 = vmatprep.subr.bf16.mxu1 %v7375_v4  ;;  %s8401_s17 = sld [smem:[#allocation56_spill]]  ;;  %s8402_s21 = sld [smem:[#allocation58_spill]]  ;;  %vm2460_vm3 = vcmask 64512  }
  0xa0   : > { %6485 = vmatprep.mubr.msk.f32.mxu0 %vm7376_vm1, %v7377_v12  ;;  %6518 = vmatprep.mubr.msk.f32.mxu1 %vm7376_vm1, %v7377_v12  ;;  %s8403_s3 = sld [smem:[#allocation57_spill]]  ;;  %s8404_s8 = sld [smem:[#allocation59_spill]] }
  0xa1   : > { %s8405_s19 = sld [smem:[#allocation9_spill]]  ;;  %s8406_s24 = sld [smem:[#allocation60_spill]] }
  0xa2   : > { %s8407_s4 = sld [smem:[#allocation19_spill]]  ;;  %s8408_s7 = sld [smem:[#allocation61_spill]] }
  0xa3   : > { %s8410_s16 = sld [smem:[#allocation20_spill]]  ;;  %s8411_s18 = sld [smem:[#allocation21_spill]] }
  0xa4   : > { %v1478_v1 = vld [vmem:[%s8399_s13] sm:$0xff]  ;;  %v1479_v2 = vld [vmem:[%s8399_s13 + $0x8] sm:$0xff]  ;;  %v1480_v7 = vld [vmem:[%s8399_s13 + $0x10] sm:$0xff]  ;;  %s8414_s25 = sld [smem:[#allocation62_spill]]  ;;  %s8415_s0 = sld [smem:[#allocation7_spill]] }
  0xa5   : > { %v1490_v3 = vld [vmem:[%s8399_s13 + $0x60] sm:$0xff]  ;;  %v6919_v5 = vpack.c.bf16 %v1479_v2, %v1478_v1  ;;  %v1491_v6 = vld [vmem:[%s8399_s13 + $0x68] sm:$0xff]  ;;  %v1481_v8 = vld [vmem:[%s8399_s13 + $0x18] sm:$0xff] }
  0xa6   : > { %v6937_v9 = vpack.c.bf16 %v1491_v6, %v1490_v3  ;;  %v1492_v10 = vld [vmem:[%s8399_s13 + $0x70] sm:$0xff]  ;;  %v1493_v11 = vld [vmem:[%s8399_s13 + $0x78] sm:$0xff]  ;;  %v6922_v13 = vpack.c.bf16 %v1481_v8, %v1480_v7  ;;  %v1482_v15 = vld [vmem:[%s8399_s13 + $0x20] sm:$0xff] }
  0xa7   : > { %6920 = vmatpush3.bf16.msra.mxu0 %v6919_v5  ;;  %v6940_v14 = vpack.c.bf16 %v1493_v11, %v1492_v10  ;;  %v1483_v16 = vld [vmem:[%s8399_s13 + $0x28] sm:$0xff]  ;;  %v1498_v17 = vld [vmem:[%s8400_s9 + $0x20] sm:$0xff]  ;;  %v1484_v22 = vld [vmem:[%s8399_s13 + $0x30] sm:$0xff] }
  0xa8   : > { %6938 = vmatpush3.bf16.msra.mxu1 %v6937_v9  ;;  %6921 = vmatprep.subr.bf16.mxu0 %v7375_v4  ;;  %v1499_v18 = vld [vmem:[%s8400_s9 + $0x28] sm:$0xff]  ;;  %v7737_v19 = vld [vmem:[#allocation2] sm:$0xff]  ;;  %v6925_v20 = vpack.c.bf16 %v1483_v16, %v1482_v15  ;;  %v1485_v23 = vld [vmem:[%s8399_s13 + $0x38] sm:$0xff]  ;;  %s8409_s15 = scalar_lea.vmem %s8407_s4, %s7631_s23 }
  0xa9   : > { %6939 = vmatprep.subr.bf16.mxu1 %v7375_v4  ;;  %v6949_v21 = vpack.c.bf16 %v1499_v18, %v1498_v17  ;;  %v1500_v24 = vld [vmem:[%s8400_s9 + $0x30] sm:$0xff]  ;;  %v1501_v25 = vld [vmem:[%s8400_s9 + $0x38] sm:$0xff]  ;;  %v6928_v26 = vpack.c.bf16 %v1485_v23, %v1484_v22  ;;  %v1486_v28 = vld [vmem:[%s8399_s13 + $0x40] sm:$0xff]  ;;  %s8412_s22 = scalar_lea.vmem %s8410_s16, %s7631_s23  ;;  %s8413_s10 = scalar_lea.vmem %s8411_s18, %s7631_s23 }
  0xaa   : > { %v6952_v27 = vpack.c.bf16 %v1501_v25, %v1500_v24  ;;  %v1487_v29 = vld [vmem:[%s8399_s13 + $0x48] sm:$0xff]  ;;  %v1506_v30 = vld [vmem:[%s8400_s9 + $0x60] sm:$0xff]  ;;  %v1488_v34 = vld [vmem:[%s8399_s13 + $0x50] sm:$0xff] }
  0xab   : > { %6923 = vmatpush3.bf16.msra.mxu0 %v6922_v13  ;;  %v1507_v31 = vld [vmem:[%s8400_s9 + $0x68] sm:$0xff]  ;;  %v6931_v32 = vpack.c.bf16 %v1487_v29, %v1486_v28  ;;  %v1489_v35 = vld [vmem:[%s8399_s13 + $0x58] sm:$0xff]  ;;  %v1508_v36 = vld [vmem:[%s8400_s9 + $0x70] sm:$0xff]  ;;  %s8416_s13 = sld [smem:[#allocation53_spill]] }
  0xac   : > { %6941 = vmatpush3.bf16.msra.mxu1 %v6940_v14  ;;  %6924 = vmatprep.subr.bf16.mxu0 %v7375_v4  ;;  %v6961_v33 = vpack.c.bf16 %v1507_v31, %v1506_v30  ;;  %v1509_v37 = vld [vmem:[%s8400_s9 + $0x78] sm:$0xff]  ;;  %v6934_v38 = vpack.c.bf16 %v1489_v35, %v1488_v34  ;;  %v1494_v40 = vld [vmem:[%s8400_s9] sm:$0xff]  ;;  %v1495_v41 = vld [vmem:[%s8400_s9 + $0x8] sm:$0xff] }
  0xad   : > { %6948 = vmatprep.subr.bf16.mxu1 %v7375_v4  ;;  %v6964_v39 = vpack.c.bf16 %v1509_v37, %v1508_v36  ;;  %v1514_v42 = vld [vmem:[%s8401_s17 + $0x20] sm:$0xff]  ;;  %v1515_v43 = vld [vmem:[%s8401_s17 + $0x28] sm:$0xff]  ;;  %v6943_v44 = vpack.c.bf16 %v1495_v41, %v1494_v40  ;;  %v1496_v45 = vld [vmem:[%s8400_s9 + $0x10] sm:$0xff] }
  0xae   : > { %6486 = vmatmul.mubr.msk.f32.vlgmr.msra.gmra.mrb[0].mxu0 %vm1568_vm2, %v7737_v19  ;;  %v1497_v46 = vld [vmem:[%s8400_s9 + $0x18] sm:$0xff]  ;;  %v6973_v47 = vpack.c.bf16 %v1515_v43, %v1514_v42  ;;  %v1502_v49 = vld [vmem:[%s8400_s9 + $0x40] sm:$0xff]  ;;  %v1503_v50 = vld [vmem:[%s8400_s9 + $0x48] sm:$0xff] }
  0xaf   : > { %6926 = vmatpush3.bf16.msra.mxu0 %v6925_v20  ;;  %6519 = vmatmul.mubr.msk.f32.vlgmr.msra.gmra.mrb[0].mxu1 %vm1568_vm2, %v7737_v19  ;;  %v6946_v48 = vpack.c.bf16 %v1497_v46, %v1496_v45  ;;  %v6955_v51 = vpack.c.bf16 %v1503_v50, %v1502_v49  ;;  %v1504_v52 = vld [vmem:[%s8400_s9 + $0x50] sm:$0xff]  ;;  %v1505_v53 = vld [vmem:[%s8400_s9 + $0x58] sm:$0xff]  ;;  %v1510_v58 = vld [vmem:[%s8401_s17] sm:$0xff] }
  0xb0   : > { %6950 = vmatpush3.bf16.msra.mxu1 %v6949_v21  ;;  %6927 = vmatprep.subr.bf16.mxu0 %v7375_v4  ;;  %v6958_v54 = vpack.c.bf16 %v1505_v53, %v1504_v52  ;;  %v1516_v55 = vld [vmem:[%s8401_s17 + $0x30] sm:$0xff]  ;;  %v1517_v56 = vld [vmem:[%s8401_s17 + $0x38] sm:$0xff]  ;;  %v1511_v59 = vld [vmem:[%s8401_s17 + $0x8] sm:$0xff] }
  0xb1   : > { %6951 = vmatprep.subr.bf16.mxu1 %v7375_v4  ;;  %6496 = vmatprep.mubr.msk.f32.mxu0 %vm7376_vm1, %v7377_v12  ;;  %v6976_v57 = vpack.c.bf16 %v1517_v56, %v1516_v55  ;;  %v1522_v60 = vld [vmem:[%s8401_s17 + $0x60] sm:$0xff]  ;;  %v6967_v61 = vpack.c.bf16 %v1511_v59, %v1510_v58  ;;  %v1523_v62 = vld [vmem:[%s8401_s17 + $0x68] sm:$0xff]  ;;  %v1512_v0 = vld [vmem:[%s8401_s17 + $0x10] sm:$0xff]  ;;  %s8417_s9 = scalar_lea.vmem %s8415_s0, %s8416_s13 }
  0xb2   : > { %6540 = vmatprep.mubr.msk.f32.mxu1 %vm7376_vm1, %v7377_v12  ;;  %v6985_v63 = vpack.c.bf16 %v1523_v62, %v1522_v60  ;;  %v1513_v1 = vld [vmem:[%s8401_s17 + $0x18] sm:$0xff]  ;;  %v1524_v3 = vld [vmem:[%s8401_s17 + $0x70] sm:$0xff]  ;;  %v1518_v7 = vld [vmem:[%s8401_s17 + $0x40] sm:$0xff] }
  0xb3   : > { %6929 = vmatpush3.bf16.msra.mxu0 %v6928_v26  ;;  %v6970_v2 = vpack.c.bf16 %v1513_v1, %v1512_v0  ;;  %v1525_v5 = vld [vmem:[%s8401_s17 + $0x78] sm:$0xff]  ;;  %v1519_v8 = vld [vmem:[%s8401_s17 + $0x48] sm:$0xff]  ;;  %v1520_v10 = vld [vmem:[%s8401_s17 + $0x50] sm:$0xff] }
  0xb4   : > { %6953 = vmatpush3.bf16.msra.mxu1 %v6952_v27  ;;  %6930 = vmatprep.subr.bf16.mxu0 %v7375_v4  ;;  %v6988_v6 = vpack.c.bf16 %v1525_v5, %v1524_v3  ;;  %v6979_v9 = vpack.c.bf16 %v1519_v8, %v1518_v7  ;;  %v1521_v11 = vld [vmem:[%s8401_s17 + $0x58] sm:$0xff]  ;;  %v6185_v23 = vld [vmem:[%s8402_s21 + $0x3] ss:$0 sm:$0xff]  ;;  %v6182_v31 = vld [vmem:[%s8402_s21] ss:$0 sm:$0xff]  ;;  %s8418_s17 = sld [smem:[#allocation63_spill]] }
  0xb5   : > { %6960 = vmatprep.subr.bf16.mxu1 %v7375_v4  ;;  %v6982_v13 = vpack.c.bf16 %v1521_v11, %v1520_v10  ;;  %v6177_v24 = vld [vmem:[%s8403_s3 + $0x3] ss:$0 sm:$0xff]  ;;  %v6174_v34 = vld [vmem:[%s8403_s3] ss:$0 sm:$0xff]  ;;  %v6184_v40 = vld [vmem:[%s8402_s21 + $0x2] ss:$0 sm:$0xff] }
  0xb6   : > { %6497 = vmatmul.mubr.msk.f32.vlgmr.msra.gmra.mrb[2].mxu0 %vm1568_vm2, %v7737_v19  ;;  %v6176_v43 = vld [vmem:[%s8403_s3 + $0x2] ss:$0 sm:$0xff] }
  0xb7   : > { %6932 = vmatpush3.bf16.msra.mxu0 %v6931_v32  ;;  %6541 = vmatmul.mubr.msk.f32.vlgmr.msra.gmra.mrb[2].mxu1 %vm1568_vm2, %v7737_v19  ;;  %v6183_v32 = vld [vmem:[%s8402_s21 + $0x1] ss:$0 sm:$0xff]  ;;  %s8419_s21 = sld [smem:[#allocation64_spill]] }
  0xb8   : > { %6962 = vmatpush3.bf16.msra.mxu1 %v6961_v33  ;;  %6933 = vmatprep.subr.bf16.mxu0 %v7375_v4  ;;  %v1543_v0 = vld [vmem:[%s8405_s19] sm:$0xff] }
  0xb9   : > { %6963 = vmatprep.subr.bf16.mxu1 %v7375_v4  ;;  %6507 = vmatprep.mubr.msk.f32.mxu0 %vm7376_vm1, %v7377_v12 }
  0xba   : > { %6562 = vmatprep.mubr.msk.f32.mxu1 %vm7376_vm1, %v7377_v12 }
  0xbb   : > { %6935 = vmatpush3.bf16.msra.mxu0 %v6934_v38 }
  0xbc   : > { %6965 = vmatpush3.bf16.msra.mxu1 %v6964_v39  ;;  %6942 = vmatprep.subr.bf16.mxu0 %v7375_v4  ;;  %v6175_v39 = vld [vmem:[%s8403_s3 + $0x1] ss:$0 sm:$0xff]  ;;  %s8425_s3 = sld [smem:[#allocation8_spill]] }
  0xbd   : > { %6972 = vmatprep.subr.bf16.mxu1 %v7375_v4 }
  0xbe   : > { %6508 = vmatmul.mubr.msk.f32.vlgmr.msra.gmra.mrb[4].mxu0 %vm1568_vm2, %v7737_v19 }
  0xbf   : > { %6944 = vmatpush3.bf16.msra.mxu0 %v6943_v44  ;;  %6563 = vmatmul.mubr.msk.f32.vlgmr.msra.gmra.mrb[4].mxu1 %vm1568_vm2, %v7737_v19 }
  0xc0   : > { %6945 = vmatprep.subr.bf16.mxu0 %v7375_v4  ;;  %6529 = vmatprep.mubr.msk.f32.mxu0 %vm7376_vm1, %v7377_v12 }
  0xc1   : > { %6974 = vmatpush3.bf16.msra.mxu1 %v6973_v47  ;;  %6584 = vmatprep.mubr.msk.f32.mxu1 %vm7376_vm1, %v7377_v12  ;;  %v6191_v47 = vld [vmem:[%s8404_s8 + $0x1] ss:$0 sm:$0xff] }
  0xc2   : > { %6975 = vmatprep.subr.bf16.mxu1 %v7375_v4 }
  0xc3   : > { %6947 = vmatpush3.bf16.msra.mxu0 %v6946_v48 }
  0xc4   : > { %6954 = vmatprep.subr.bf16.mxu0 %v7375_v4 }
  0xc5   : > { %6977 = vmatpush3.bf16.msra.mxu1 %v6976_v57 }
  0xc6   : > { %6530 = vmatmul.mubr.msk.f32.vlgmr.msra.gmra.mrb[6].mxu0 %vm1568_vm2, %v7737_v19  ;;  %6984 = vmatprep.subr.bf16.mxu1 %v7375_v4 }
  0xc7   : > { %6956 = vmatpush3.bf16.msra.mxu0 %v6955_v51  ;;  %6551 = vmatprep.mubr.msk.f32.mxu0 %vm7376_vm1, %v7377_v12  ;;  %v6190_v51 = vld [vmem:[%s8404_s8] ss:$0 sm:$0xff] }
  0xc8   : > { %6957 = vmatprep.subr.bf16.mxu0 %v7375_v4  ;;  %6585 = vmatmul.mubr.msk.f32.vlgmr.msra.gmra.mrb[6].mxu1 %vm1568_vm2, %v7737_v19 }
  0xc9   : > { %6986 = vmatpush3.bf16.msra.mxu1 %v6985_v63  ;;  %6606 = vmatprep.mubr.msk.f32.mxu1 %vm7376_vm1, %v7377_v12 }
  0xca   : > { %6987 = vmatprep.subr.bf16.mxu1 %v7375_v4 }
  0xcb   : > { %6959 = vmatpush3.bf16.msra.mxu0 %v6958_v54 }
  0xcc   : > { %6966 = vmatprep.subr.bf16.mxu0 %v7375_v4 }
  0xcd   : > { %6989 = vmatpush3.bf16.msra.mxu1 %v6988_v6 }
  0xce   : > { %6552 = vmatmul.mubr.msk.f32.vlgmr.msra.gmra.mrb[8].mxu0 %vm1568_vm2, %v7737_v19  ;;  %6624 = vmatprep.subr.mxu1 %v7377_v12 }
  0xcf   : > { %6573 = vmatprep.mubr.msk.f32.mxu0 %vm7376_vm1, %v7377_v12  ;;  %6968 = vmatpush3.bf16.msra.mxu0 %v6967_v61 }
  0xd0   : > { %6969 = vmatprep.subr.bf16.mxu0 %v7375_v4  ;;  %6607 = vmatmul.mubr.msk.f32.vlgmr.msra.gmra.mrb[8].mxu1 %vm1568_vm2, %v7737_v19 }
  0xd1   : > { %6626 = vmatprep.mubr.msk.f32.mxu1 %vm7376_vm1, %v7377_v12 }
  0xd3   : > { %6971 = vmatpush3.bf16.msra.mxu0 %v6970_v2 }
  0xd4   : > { %6978 = vmatprep.subr.bf16.mxu0 %v7375_v4 }
  0xd6   : > { %6574 = vmatmul.mubr.msk.f32.vlgmr.msra.gmra.mrb[10].mxu0 %vm1568_vm2, %v7737_v19 }
  0xd7   : > { %6980 = vmatpush3.bf16.msra.mxu0 %v6979_v9  ;;  %6595 = vmatprep.mubr.msk.f32.mxu0 %vm7376_vm1, %v7377_v12 }
  0xd8   : > { %6981 = vmatprep.subr.bf16.mxu0 %v7375_v4 }
  0xdb   : > { %6983 = vmatpush3.bf16.msra.mxu0 %v6982_v13 }
  0xdc   : > { %6609 = vmatprep.subr.mxu0 %v7377_v12 }
  0xde   : > { %6596 = vmatmul.mubr.msk.f32.vlgmr.msra.gmra.mrb[12].mxu0 %vm1568_vm2, %v7737_v19 }
  0xdf   : > { %6611 = vmatprep.mubr.msk.f32.mxu0 %vm7376_vm1, %v7377_v12 }
 0x181   : > { %v1638_v14 = vpop.f32.mrb[0].mxu0 }
 0x182   : > { %v6487_v15 = vpop.f32.mrb[1].mxu0  ;;  %v1848_v16 = vpop.f32.mrb[0].mxu1  ;;  %v1639_v38 = vadd.f32 %v6174_v34, %v1638_v14 }
 0x183   : > { %v6520_v17 = vpop.f32.mrb[1].mxu1  ;;  %v1849_v30 = vadd.f32 %v6177_v24, %v1848_v16 }
 0x189   : > { %v1708_v18 = vpop.f32.mrb[2].mxu0 }
 0x18a   : > { %v6498_v20 = vpop.f32.mrb[3].mxu0  ;;  %v2012_v21 = vpop.f32.mrb[2].mxu1  ;;  %v1709_v41 = vadd.f32 %v6175_v39, %v1708_v18 }
 0x18b   : > { %v6542_v22 = vpop.f32.mrb[3].mxu1  ;;  %v2013_v37 = vadd.f32 %v6183_v32, %v2012_v21 }
 0x191   : > { %v1778_v25 = vpop.f32.mrb[4].mxu0 }
 0x192   : > { %v6509_v26 = vpop.f32.mrb[5].mxu0  ;;  %v2152_v27 = vpop.f32.mrb[4].mxu1  ;;  %v1779_v46 = vadd.f32 %v6176_v43, %v1778_v25 }
 0x193   : > { %v2153_v28 = vadd.f32 %v6185_v23, %v2152_v27  ;;  %v6564_v29 = vpop.f32.mrb[5].mxu1 }
 0x195   : > { %6625 = vmatpush3.xpose.msk.msra.mxu1 %vm2460_vm3, %v2153_v28 }
 0x196   : > { %6634 = vmatprep.subr.mxu1 %v7377_v12 }
 0x198   : > { %6627 = vmatmul.mubr.msk.f32.vlgmr.msra.gmra.mrb[10].mxu1 %vm2460_vm3, %v1849_v30 }
 0x199   : > { %v1942_v33 = vpop.f32.mrb[6].mxu0  ;;  %6636 = vmatprep.mubr.msk.f32.mxu1 %vm7376_vm1, %v7377_v12 }
 0x19a   : > { %v1943_v35 = vadd.f32 %v6182_v31, %v1942_v33  ;;  %v6531_v36 = vpop.f32.mrb[7].mxu0 }
 0x19b   : > { %v2316_v48 = vpop.f32.mrb[6].mxu1 }
 0x19c   : > { %6610 = vmatpush3.xpose.msk.msra.mxu0 %vm2460_vm3, %v1943_v35  ;;  %v2317_v49 = vadd.f32 %v6191_v47, %v2316_v48  ;;  %v6586_v50 = vpop.f32.mrb[7].mxu1  ;;  %v6193_v47 = vld [vmem:[%s8404_s8 + $0x3] ss:$0 sm:$0xff] }
 0x19d   : > { %6614 = vmatprep.subr.mxu0 %v7377_v12 }
 0x19e   : > { %6635 = vmatpush3.msra.mxu1 %v2317_v49 }
 0x19f   : > { %6612 = vmatmul.mubr.msk.f32.vlgmr.msra.gmra.mrb[14].mxu0 %vm2460_vm3, %v1639_v38  ;;  %6644 = vmatprep.subr.mxu1 %v7377_v12 }
 0x1a0   : > { %6615 = vmatpush3.xpose.msk.msra.mxu0 %vm2460_vm3, %v2013_v37  ;;  %6616 = vmatprep.mubr.msk.f32.mxu0 %vm7376_vm1, %v7377_v12 }
 0x1a1   : > { %v2082_v42 = vpop.f32.mrb[8].mxu0  ;;  %6619 = vmatprep.subr.mxu0 %v7377_v12 }
 0x1a2   : > { %v2083_v44 = vadd.f32 %v6184_v40, %v2082_v42  ;;  %v6553_v45 = vpop.f32.mrb[9].mxu0  ;;  %v6192_v42 = vld [vmem:[%s8404_s8 + $0x2] ss:$0 sm:$0xff] }
 0x1a3   : > { %6617 = vmatmul.mubr.msk.f32.vlgmr.msra.gmra.mrb[16].mxu0 %vm2460_vm3, %v1709_v41  ;;  %v7876_v55 = vpop.f32.mrb[8].mxu1 }
 0x1a4   : > { %6620 = vmatpush3.xpose.msk.msra.mxu0 %vm2460_vm3, %v2083_v44  ;;  %6621 = vmatprep.mubr.msk.f32.mxu0 %vm7376_vm1, %v7377_v12  ;;  %v6608_v56 = vpop.f32.mrb[9].mxu1  ;;  %v2457_v50 = vadd.f32 %v6193_v47, %v7876_v55  ;;  %v1538_v55 = vld [vmem:[%s8406_s24] sm:$0xff] }
 0x1a5   : > { %6629 = vmatprep.subr.mxu0 %v7377_v12  ;;  %v1539_v56 = vld [vmem:[%s8406_s24 + $0x8] sm:$0xff] }
 0x1a7   : > { %6622 = vmatmul.mubr.msk.f32.vlgmr.msra.gmra.mrb[18].mxu0 %vm2460_vm3, %v1779_v46 }
 0x1a8   : > { %6631 = vmatprep.mubr.msk.f32.mxu0 %vm7376_vm1, %v7377_v12 }
 0x1a9   : > { %v2246_v52 = vpop.f32.mrb[10].mxu0 }
 0x1aa   : > { %v2247_v53 = vadd.f32 %v6190_v51, %v2246_v52  ;;  %v6575_v54 = vpop.f32.mrb[11].mxu0 }
 0x1ac   : > { %6630 = vmatpush3.msra.mxu0 %v2247_v53 }
 0x1ad   : > { %6639 = vmatprep.subr.mxu0 %v7377_v12 }
 0x1b1   : > { %v7879_v57 = vpop.f32.mrb[12].mxu0 }
 0x1b2   : > { %v6597_v58 = vpop.f32.mrb[13].mxu0  ;;  %v2387_v46 = vadd.f32 %v6192_v42, %v7879_v57  ;;  %v1540_v57 = vld [vmem:[%s8406_s24 + $0x10] sm:$0xff] }
 0x26b   : > { %v2761_v59 = vpop.f32.mrb[10].mxu1 }
 0x26c   : > { %v6628_v60 = vpop.f32.mrb[11].mxu1  ;;  %v2768_v9 = vmul.f32 0.35355338, %v2761_v59 }
 0x26d   : > { %v1541_v60 = vld [vmem:[%s8406_s24 + $0x18] sm:$0xff] }
 0x26e   : > { %v2772_v16 = vadd.f32 %v2768_v9, %v1543_v0 }
 0x270   : > { %v2782_v17 = vsel %vm2460_vm3, %v2772_v16, -inf }
 0x272   : > { %v2533_v61 = vpop.f32.mrb[14].mxu0 }
 0x273   : > { %v2765_v62 = vmul.f32 0.35355338, %v2533_v61  ;;  %v6613_v63 = vpop.f32.mrb[15].mxu0 }
 0x275   : > { %v2769_v1 = vadd.f32 %v2765_v62, %v1543_v0 }
 0x276   : > { %v2609_v2 = vpop.f32.mrb[16].mxu0 }
 0x277   : > { %v2766_v3 = vmul.f32 0.35355338, %v2609_v2  ;;  %v6618_v5 = vpop.f32.mrb[17].mxu0  ;;  %v2773_v6 = vsel %vm2460_vm3, %v2769_v1, -inf }
 0x278   : > { %2774 = vmax.xlane.f32.xlu0 %v2773_v6 }
 0x279   : > { %v2770_v7 = vadd.f32 %v2766_v3, %v1543_v0 }
 0x27a   : > { %v2685_v8 = vpop.f32.mrb[18].mxu0 }
 0x27b   : > { %v2767_v10 = vmul.f32 0.35355338, %v2685_v8  ;;  %v6623_v11 = vpop.f32.mrb[19].mxu0  ;;  %v2776_v13 = vsel %vm2460_vm3, %v2770_v7, -inf }
 0x27c   : > { %2777 = vmax.xlane.f32.xlu0 %v2776_v13 }
 0x27d   : > { %v2771_v14 = vadd.f32 %v2767_v10, %v1543_v0 }
 0x27f   : > { %v2779_v15 = vsel %vm2460_vm3, %v2771_v14, -inf }
 0x280   : > { %2780 = vmax.xlane.f32.xlu1 %v2779_v15 }
 0x284   : > { %2783 = vmax.xlane.f32.xlu1 %v2782_v17  ;;  %v6214_v17 = vld [vmem:[%s8409_s15] ss:$0 sm:$0xff] }
 0x305   : > { %v2775_v18 = vpop.xlane.xlu0 %2774 }
 0x306   : > { %v2785_v20 = vsub.f32 %v2769_v1, %v2775_v18 }
 0x308   : > { %v2789_v21 = vmul.f32 1.442695, %v2785_v20 }
 0x309   : > { %v2778_v22 = vpop.xlane.xlu0 %2777 }
 0x30a   : > { %7209 = vpow2.f32 %v2789_v21  ;;  %v2786_v23 = vsub.f32 %v2770_v7, %v2778_v22 }
 0x30c   : > { %v2791_v24 = vmul.f32 1.442695, %v2786_v23 }
 0x30d   : > { %v2781_v25 = vpop.xlane.xlu1 %2780 }
 0x30e   : > { %7211 = vpow2.f32 %v2791_v24  ;;  %v2787_v26 = vsub.f32 %v2771_v14, %v2781_v25 }
 0x310   : > { %v2793_v27 = vmul.f32 1.442695, %v2787_v26 }
 0x311   : > { %v2784_v28 = vpop.xlane.xlu1 %2783 }
 0x312   : > { %7213 = vpow2.f32 %v2793_v27  ;;  %v2788_v29 = vsub.f32 %v2772_v16, %v2784_v28 }
 0x314   : > { %v7210_v30 = vpop.eup %7209  ;;  %v2795_v31 = vmul.f32 1.442695, %v2788_v29 }
 0x315   : > { %v2797_v32 = vsel %vm2460_vm3, %v7210_v30, 0.0 }
 0x316   : > { %7215 = vpow2.f32 %v2795_v31  ;;  %2798 = vadd.xlane.f32.xlu0 %v2797_v32  ;;  %v3448_v31 = vld [vmem:[%s8408_s7 + $0x8] sm:$0xff]  ;;  %v3451_v32 = vld [vmem:[%s8408_s7 + $0x20] sm:$0xff] }
 0x318   : > { %v7212_v33 = vpop.eup %7211 }
 0x319   : > { %v2800_v34 = vsel %vm2460_vm3, %v7212_v33, 0.0 }
 0x31a   : > { %2801 = vadd.xlane.f32.xlu1 %v2800_v34  ;;  %v3452_v34 = vld [vmem:[%s8408_s7 + $0x28] sm:$0xff] }
 0x31c   : > { %v7214_v35 = vpop.eup %7213 }
 0x31d   : > { %v2803_v36 = vsel %vm2460_vm3, %v7214_v35, 0.0 }
 0x31e   : > { %2804 = vadd.xlane.f32.xlu0 %v2803_v36  ;;  %v3450_v36 = vld [vmem:[%s8408_s7 + $0x18] sm:$0xff] }
 0x320   : > { %v7216_v37 = vpop.eup %7215 }
 0x321   : > { %v2806_v38 = vsel %vm2460_vm3, %v7216_v37, 0.0 }
 0x322   : > { %2807 = vadd.xlane.f32.xlu1 %v2806_v38 }
 0x3a3   : > { %v2799_v39 = vpop.xlane.xlu0 %2798 }
 0x3a4   : > { %7217 = vrcp.f32 %v2799_v39  ;;  %v3454_v39 = vld [vmem:[%s8408_s7 + $0x38] sm:$0xff] }
 0x3a7   : > { %v2802_v40 = vpop.xlane.xlu1 %2801 }
 0x3a8   : > { %7219 = vrcp.f32 %v2802_v40 }
 0x3ab   : > { %v2805_v41 = vpop.xlane.xlu0 %2804 }
 0x3ac   : > { %7221 = vrcp.f32 %v2805_v41 }
 0x3ae   : > { %v7218_v43 = vpop.eup %7217 }
 0x3af   : > { %v2810_v44 = vmul.f32 %v7218_v43, %v7210_v30  ;;  %v2808_v45 = vpop.xlane.xlu1 %2807  ;;  %v3447_v30 = vld [vmem:[%s8408_s7] sm:$0xff] }
 0x3b0   : > { %7223 = vrcp.f32 %v2808_v45  ;;  %v6215_v45 = vld [vmem:[%s8412_s22] ss:$0 sm:$0xff] }
 0x3b1   : > { %6632 = vmatmul.mubr.msk.f32.vlgmr.msra.gmra.mrb[20].mxu0 %vm2460_vm3, %v2810_v44 }
 0x3b2   : > { %v7220_v48 = vpop.eup %7219  ;;  %6640 = vmatpush3.msra.mxu0 %v2387_v46  ;;  %6641 = vmatprep.mubr.msk.f32.mxu0 %vm7376_vm1, %v7377_v12  ;;  %v3455_v46 = vld [vmem:[%s8408_s7 + $0x40] sm:$0xff] }
 0x3b3   : > { %v2812_v49 = vmul.f32 %v7220_v48, %v7212_v33  ;;  %6649 = vmatprep.subr.mxu0 %v7377_v12  ;;  %v6991_v33 = vpack.c.bf16 %v3448_v31, %v3447_v30  ;;  %v3456_v48 = vld [vmem:[%s8408_s7 + $0x48] sm:$0xff] }
 0x3b5   : > { %6637 = vmatmul.mubr.msk.f32.vlgmr.msra.gmra.mrb[12].mxu1 %vm2460_vm3, %v2812_v49  ;;  %v3459_v49 = vld [vmem:[%s8408_s7 + $0x60] sm:$0xff] }
 0x3b6   : > { %v7222_v51 = vpop.eup %7221  ;;  %6645 = vmatpush3.msra.mxu1 %v2457_v50  ;;  %6646 = vmatprep.mubr.msk.f32.mxu1 %vm7376_vm1, %v7377_v12  ;;  %v3460_v50 = vld [vmem:[%s8408_s7 + $0x68] sm:$0xff] }
 0x3b7   : > { %v2814_v52 = vmul.f32 %v7222_v51, %v7214_v35  ;;  %6654 = vmatprep.subr.mxu1 %v7377_v12  ;;  %v3449_v35 = vld [vmem:[%s8408_s7 + $0x10] sm:$0xff]  ;;  %v6216_v51 = vld [vmem:[%s8413_s10] ss:$0 sm:$0xff] }
 0x3b8   : > { %v6994_v38 = vpack.c.bf16 %v3450_v36, %v3449_v35  ;;  %v3486_v35 = vld [vmem:[%s8418_s17 + $0x38] sm:$0xff] }
 0x3b9   : > { %6642 = vmatmul.mubr.msk.f32.vlgmr.msra.gmra.mrb[22].mxu0 %vm2460_vm3, %v2814_v52 }
 0x3ba   : > { %v7224_v53 = vpop.eup %7223  ;;  %6651 = vmatprep.mubr.msk.f32.mxu0 %vm7376_vm1, %v7377_v12  ;;  %6650 = vmatpush3.msra.mxu0 %v1538_v55  ;;  %v3457_v55 = vld [vmem:[%s8408_s7 + $0x50] sm:$0xff] }
 0x3bb   : > { %v2816_v54 = vmul.f32 %v7224_v53, %v7216_v37  ;;  %6659 = vmatprep.subr.mxu0 %v7377_v12  ;;  %v3453_v37 = vld [vmem:[%s8408_s7 + $0x30] sm:$0xff]  ;;  %v7003_v53 = vpack.c.bf16 %v3456_v48, %v3455_v46 }
 0x3bc   : > { %v7000_v40 = vpack.c.bf16 %v3454_v39, %v3453_v37  ;;  %v3487_v37 = vld [vmem:[%s8418_s17 + $0x40] sm:$0xff] }
 0x3bd   : > { %6647 = vmatmul.mubr.msk.f32.vlgmr.msra.gmra.mrb[14].mxu1 %vm2460_vm3, %v2816_v54  ;;  %v7009_v54 = vpack.c.bf16 %v3460_v50, %v3459_v49 }
 0x3be   : > { %6656 = vmatprep.mubr.msk.f32.mxu1 %vm7376_vm1, %v7377_v12  ;;  %6655 = vmatpush3.msra.mxu1 %v1539_v56 }
 0x3bf   : > { %6664 = vmatprep.subr.mxu1 %v7377_v12 }
 0x484   : > { %v2886_v58 = vpop.f32.mrb[20].mxu0 }
 0x485   : > { %v6633_v59 = vpop.f32.mrb[21].mxu0  ;;  %6652 = vmatmul.mubr.msk.f32.vlgmr.msra.gmra.mrb[24].mxu0 %vm2460_vm3, %v2886_v58  ;;  %v3461_v58 = vld [vmem:[%s8408_s7 + $0x70] sm:$0xff] }
 0x486   : > { %6660 = vmatpush3.msra.mxu0 %v1540_v57  ;;  %6661 = vmatprep.mubr.msk.f32.mxu0 %vm7376_vm1, %v7377_v12  ;;  %v3458_v57 = vld [vmem:[%s8408_s7 + $0x58] sm:$0xff] }
 0x487   : > { %6990 = vmatprep.subr.bf16.mxu0 %v7375_v4  ;;  %v3462_v59 = vld [vmem:[%s8408_s7 + $0x78] sm:$0xff] }
 0x488   : > { %v2959_v61 = vpop.f32.mrb[12].mxu1 }
 0x489   : > { %v6638_v62 = vpop.f32.mrb[13].mxu1  ;;  %6657 = vmatmul.mubr.msk.f32.vlgmr.msra.gmra.mrb[16].mxu1 %vm2460_vm3, %v2959_v61  ;;  %v7012_v61 = vpack.c.bf16 %v3462_v59, %v3461_v58  ;;  %v6225_v58 = vld [vmem:[%s7684_s1] ss:$0 sm:$0xff]  ;;  %v6226_v59 = vld [vmem:[%s7684_s1 + $0x1] ss:$0 sm:$0xff] }
 0x48a   : > { %6665 = vmatpush3.msra.mxu1 %v1541_v60  ;;  %6666 = vmatprep.mubr.msk.f32.mxu1 %vm7376_vm1, %v7377_v12  ;;  %v7006_v60 = vpack.c.bf16 %v3458_v57, %v3457_v55  ;;  %v3463_v62 = vld [vmem:[%s8414_s25] sm:$0xff] }
 0x48b   : > { %6996 = vmatprep.subr.bf16.mxu1 %v7375_v4 }
 0x48c   : > { %v3032_v63 = vpop.f32.mrb[22].mxu0 }
 0x48d   : > { %v6643_v0 = vpop.f32.mrb[23].mxu0  ;;  %6662 = vmatmul.mubr.msk.f32.vlgmr.msra.gmra.mrb[26].mxu0 %vm2460_vm3, %v3032_v63  ;;  %v3464_v63 = vld [vmem:[%s8414_s25 + $0x8] sm:$0xff] }
 0x48e   : > { %6677 = vmatprep.mubr.msk.f32.mxu0 %vm7376_vm1, %v7377_v12  ;;  %6992 = vmatpush3.bf16.msra.mxu0 %v6991_v33  ;;  %v3467_v0 = vld [vmem:[%s8414_s25 + $0x20] sm:$0xff]  ;;  %v3482_v33 = vld [vmem:[%s8418_s17 + $0x18] sm:$0xff] }
 0x48f   : > { %6993 = vmatprep.subr.bf16.mxu0 %v7375_v4 }
 0x490   : > { %v3105_v1 = vpop.f32.mrb[14].mxu1 }
 0x491   : > { %v6648_v2 = vpop.f32.mrb[15].mxu1  ;;  %6667 = vmatmul.mubr.msk.f32.vlgmr.msra.gmra.mrb[18].mxu1 %vm2460_vm3, %v3105_v1  ;;  %v3468_v1 = vld [vmem:[%s8414_s25 + $0x28] sm:$0xff] }
 0x492   : > { %6688 = vmatprep.mubr.msk.f32.mxu1 %vm7376_vm1, %v7377_v12  ;;  %6995 = vmatpush3.bf16.msra.mxu0 %v6994_v38  ;;  %v7015_v2 = vpack.c.bf16 %v3464_v63, %v3463_v62  ;;  %v3488_v38 = vld [vmem:[%s8418_s17 + $0x48] sm:$0xff]  ;;  %v6217_v62 = vld [vmem:[%s8419_s21] ss:$0 sm:$0xff]  ;;  %v6218_v63 = vld [vmem:[%s8419_s21 + $0x1] ss:$0 sm:$0xff] }
 0x493   : > { %7002 = vmatprep.subr.bf16.mxu0 %v7375_v4  ;;  %v7051_v39 = vpack.c.bf16 %v3488_v38, %v3487_v37 }
 0x558   : > { %v3178_v3 = vpop.f32.mrb[24].mxu0 }
 0x559   : > { %v6653_v5 = vpop.f32.mrb[25].mxu0  ;;  %v3401_v7 = vsel %vm1568_vm2, %v3178_v3, 0.0  ;;  %v7021_v3 = vpack.c.bf16 %v3468_v1, %v3467_v0 }
 0x55a   : > { %v3465_v5 = vld [vmem:[%s8414_s25 + $0x10] sm:$0xff] }
 0x55c   : > { %v3251_v6 = vpop.f32.mrb[16].mxu1 }
 0x55d   : > { %v3402_v8 = vsel %vm1568_vm2, %v3251_v6, 0.0  ;;  %v6658_v9 = vpop.f32.mrb[17].mxu1  ;;  %v3466_v6 = vld [vmem:[%s8414_s25 + $0x18] sm:$0xff] }
 0x55e   : > { %v3403_v10 = vadd.f32 %v3402_v8, %v3401_v7  ;;  %v3469_v7 = vld [vmem:[%s8414_s25 + $0x30] sm:$0xff]  ;;  %v3470_v8 = vld [vmem:[%s8414_s25 + $0x38] sm:$0xff]  ;;  %v7018_v9 = vpack.c.bf16 %v3466_v6, %v3465_v5 }
 0x560   : > { %v3324_v11 = vpop.f32.mrb[26].mxu0 }
 0x561   : > { %v3404_v13 = vsel %vm1568_vm2, %v3324_v11, 0.0  ;;  %v6663_v14 = vpop.f32.mrb[27].mxu0  ;;  %v3471_v11 = vld [vmem:[%s8414_s25 + $0x40] sm:$0xff] }
 0x562   : > { %v3405_v15 = vadd.f32 %v3404_v13, %v3403_v10  ;;  %v7024_v10 = vpack.c.bf16 %v3470_v8, %v3469_v7  ;;  %v3472_v13 = vld [vmem:[%s8414_s25 + $0x48] sm:$0xff]  ;;  %v3475_v14 = vld [vmem:[%s8414_s25 + $0x60] sm:$0xff] }
 0x563   : > { %v6227_v7 = vld [vmem:[%s7684_s1 + $0x2] ss:$0 sm:$0xff]  ;;  %v6228_v8 = vld [vmem:[%s7684_s1 + $0x3] ss:$0 sm:$0xff] }
 0x564   : > { %v3397_v16 = vpop.f32.mrb[18].mxu1 }
 0x565   : > { %v3406_v18 = vsel %vm1568_vm2, %v3397_v16, 0.0  ;;  %v6668_v20 = vpop.f32.mrb[19].mxu1  ;;  %v8003_v16 = vld [vmem:[%s8417_s9] sm:$0xff] }
 0x566   : > { %v3407_v21 = vadd.f32 %v3406_v18, %v3405_v15  ;;  %v3476_v15 = vld [vmem:[%s8414_s25 + $0x68] sm:$0xff]  ;;  %v3473_v20 = vld [vmem:[%s8414_s25 + $0x50] sm:$0xff] }
 0x567   : > { %v7033_v18 = vpack.c.bf16 %v3476_v15, %v3475_v14 }
 0x568   : > { %v3414_v22 = vadd.f32 %v6214_v17, %v3407_v21  ;;  %v7027_v17 = vpack.c.bf16 %v3472_v13, %v3471_v11  ;;  %v3474_v21 = vld [vmem:[%s8414_s25 + $0x58] sm:$0xff]  ;;  %v6219_v11 = vld [vmem:[%s8419_s21 + $0x2] ss:$0 sm:$0xff]  ;;  %v6220_v13 = vld [vmem:[%s8419_s21 + $0x3] ss:$0 sm:$0xff] }
 0x56a   : > { %v3415_v23 = vadd.f32 %v3414_v22, %v7737_v19  ;;  %v6997_v19 = vpack.c.bf16 %v3452_v34, %v3451_v32  ;;  %v3477_v22 = vld [vmem:[%s8414_s25 + $0x70] sm:$0xff] }
 0x56b   : > { %v3481_v32 = vld [vmem:[%s8418_s17 + $0x10] sm:$0xff] }
 0x56c   : > { %v3418_v24 = vsel %vm1568_vm2, %v3415_v23, 0.0  ;;  %6998 = vmatpush3.bf16.msra.mxu1 %v6997_v19  ;;  %v3485_v34 = vld [vmem:[%s8418_s17 + $0x30] sm:$0xff]  ;;  %v7042_v19 = vpack.c.bf16 %v3482_v33, %v3481_v32 }
 0x56d   : > { %3419 = vadd.xlane.f32.xlu0 %v3418_v24  ;;  %6999 = vmatprep.subr.bf16.mxu1 %v7375_v4  ;;  %v7030_v24 = vpack.c.bf16 %v3474_v21, %v3473_v20  ;;  %v7048_v36 = vpack.c.bf16 %v3486_v35, %v3485_v34  ;;  %v6233_v21 = vld [vmem:[%s7687_s6] ss:$0 sm:$0xff] }
 0x570   : > { %7001 = vmatpush3.bf16.msra.mxu1 %v7000_v40  ;;  %v3491_v40 = vld [vmem:[%s8418_s17 + $0x60] sm:$0xff] }
 0x571   : > { %7008 = vmatprep.subr.bf16.mxu1 %v7375_v4 }
 0x5fa   : > { %v3420_v25 = vpop.xlane.xlu0 %3419 }
 0x5fb   : > { %v3422_v26 = vmul.f32 0.03125, %v3420_v25 }
 0x5fd   : > { %v3423_v27 = vsub.f32 %v3415_v23, %v3422_v26  ;;  %v3478_v23 = vld [vmem:[%s8414_s25 + $0x78] sm:$0xff]  ;;  %v3479_v26 = vld [vmem:[%s8418_s17] sm:$0xff] }
 0x5fe   : > { %v7036_v25 = vpack.c.bf16 %v3478_v23, %v3477_v22  ;;  %v6234_v22 = vld [vmem:[%s7687_s6 + $0x1] ss:$0 sm:$0xff] }
 0x5ff   : > { %v3424_v28 = vmul.f32 %v3423_v27, %v3423_v27 }
 0x601   : > { %v3425_v29 = vsel %vm1568_vm2, %v3424_v28, 0.0  ;;  %v3483_v28 = vld [vmem:[%s8418_s17 + $0x20] sm:$0xff] }
 0x602   : > { %3426 = vadd.xlane.f32.xlu1 %v3425_v29  ;;  %v3484_v29 = vld [vmem:[%s8418_s17 + $0x28] sm:$0xff] }
 0x603   : > { %v7045_v31 = vpack.c.bf16 %v3484_v29, %v3483_v28 }
 0x68f   : > { %v3427_v41 = vpop.xlane.xlu1 %3426 }
 0x690   : > { %v3428_v42 = vmul.f32 0.03125, %v3427_v41  ;;  %v3492_v41 = vld [vmem:[%s8418_s17 + $0x68] sm:$0xff] }
 0x692   : > { %v3429_v43 = vadd.f32 1e-05, %v3428_v42  ;;  %v7057_v42 = vpack.c.bf16 %v3492_v41, %v3491_v40 }
 0x694   : > { %7225 = vrsqrt.f32 %v3429_v43  ;;  %v3489_v43 = vld [vmem:[%s8418_s17 + $0x50] sm:$0xff] }
 0x69e   : > { %v7226_v44 = vpop.eup %7225 }
 0x69f   : > { %v3431_v47 = vmul.f32 %v7226_v44, %v3423_v27  ;;  %v3480_v27 = vld [vmem:[%s8418_s17 + $0x8] sm:$0xff]  ;;  %v3490_v44 = vld [vmem:[%s8418_s17 + $0x58] sm:$0xff] }
 0x6a0   : > { %v7039_v30 = vpack.c.bf16 %v3480_v27, %v3479_v26  ;;  %v7054_v46 = vpack.c.bf16 %v3490_v44, %v3489_v43 }
 0x6a1   : > { %v3438_v52 = vmul.f32 %v6215_v45, %v3431_v47  ;;  %v3493_v45 = vld [vmem:[%s8418_s17 + $0x70] sm:$0xff]  ;;  %v3494_v47 = vld [vmem:[%s8418_s17 + $0x78] sm:$0xff] }
 0x6a2   : > { %v7060_v48 = vpack.c.bf16 %v3494_v47, %v3493_v45 }
 0x6a3   : > { %v7961_v56 = vadd.f32 %v6216_v51, %v3438_v52 }
 0x6a5   : > { %6678 = vmatmul.mubr.msk.f32.vlgmr.msra.gmra.mrb[28].mxu0 %vm1568_vm2, %v7961_v56  ;;  %6689 = vmatmul.mubr.msk.f32.vlgmr.msra.gmra.mrb[20].mxu1 %vm1568_vm2, %v7961_v56 }
 0x6a6   : > { %7004 = vmatpush3.bf16.msra.mxu0 %v7003_v53  ;;  %7010 = vmatpush3.bf16.msra.mxu1 %v7009_v54 }
 0x6a7   : > { %7005 = vmatprep.subr.bf16.mxu0 %v7375_v4  ;;  %7011 = vmatprep.subr.bf16.mxu1 %v7375_v4 }
 0x6a8   : > { %6699 = vmatprep.mubr.msk.f32.mxu0 %vm7376_vm1, %v7377_v12  ;;  %6710 = vmatprep.mubr.msk.f32.mxu1 %vm7376_vm1, %v7377_v12 }
 0x6aa   : > { %7007 = vmatpush3.bf16.msra.mxu0 %v7006_v60  ;;  %7013 = vmatpush3.bf16.msra.mxu1 %v7012_v61 }
 0x6ab   : > { %7014 = vmatprep.subr.bf16.mxu0 %v7375_v4  ;;  %7020 = vmatprep.subr.bf16.mxu1 %v7375_v4 }
 0x6ad   : > { %6700 = vmatmul.mubr.msk.f32.vlgmr.msra.gmra.mrb[30].mxu0 %vm1568_vm2, %v7961_v56  ;;  %6711 = vmatmul.mubr.msk.f32.vlgmr.msra.gmra.mrb[22].mxu1 %vm1568_vm2, %v7961_v56 }
 0x6ae   : > { %7016 = vmatpush3.bf16.msra.mxu0 %v7015_v2  ;;  %7022 = vmatpush3.bf16.msra.mxu1 %v7021_v3 }
 0x6af   : > { %7017 = vmatprep.subr.bf16.mxu0 %v7375_v4  ;;  %7023 = vmatprep.subr.bf16.mxu1 %v7375_v4 }
 0x6b0   : > { %6721 = vmatprep.mubr.msk.f32.mxu0 %vm7376_vm1, %v7377_v12  ;;  %6732 = vmatprep.mubr.msk.f32.mxu1 %vm7376_vm1, %v7377_v12 }
 0x6b2   : > { %7019 = vmatpush3.bf16.msra.mxu0 %v7018_v9  ;;  %7025 = vmatpush3.bf16.msra.mxu1 %v7024_v10 }
 0x6b3   : > { %7026 = vmatprep.subr.bf16.mxu0 %v7375_v4  ;;  %7032 = vmatprep.subr.bf16.mxu1 %v7375_v4 }
 0x6b5   : > { %6722 = vmatmul.mubr.msk.f32.vlgmr.msra.gmra.mrb[32].mxu0 %vm1568_vm2, %v8003_v16  ;;  %6733 = vmatmul.mubr.msk.f32.vlgmr.msra.gmra.mrb[24].mxu1 %vm1568_vm2, %v8003_v16 }
 0x6b6   : > { %7028 = vmatpush3.bf16.msra.mxu0 %v7027_v17  ;;  %7034 = vmatpush3.bf16.msra.mxu1 %v7033_v18 }
 0x6b7   : > { %7029 = vmatprep.subr.bf16.mxu0 %v7375_v4  ;;  %7035 = vmatprep.subr.bf16.mxu1 %v7375_v4 }
 0x6b8   : > { %6743 = vmatprep.mubr.msk.f32.mxu0 %vm7376_vm1, %v7377_v12  ;;  %6754 = vmatprep.mubr.msk.f32.mxu1 %vm7376_vm1, %v7377_v12 }
 0x6ba   : > { %7031 = vmatpush3.bf16.msra.mxu0 %v7030_v24  ;;  %7037 = vmatpush3.bf16.msra.mxu1 %v7036_v25 }
 0x6bb   : > { %7038 = vmatprep.subr.bf16.mxu0 %v7375_v4  ;;  %7044 = vmatprep.subr.bf16.mxu1 %v7375_v4 }
 0x6bd   : > { %6744 = vmatmul.mubr.msk.f32.vlgmr.msra.gmra.mrb[34].mxu0 %vm1568_vm2, %v8003_v16  ;;  %6755 = vmatmul.mubr.msk.f32.vlgmr.msra.gmra.mrb[26].mxu1 %vm1568_vm2, %v8003_v16 }
 0x6be   : > { %7040 = vmatpush3.bf16.msra.mxu0 %v7039_v30  ;;  %7046 = vmatpush3.bf16.msra.mxu1 %v7045_v31 }
 0x6bf   : > { %7041 = vmatprep.subr.bf16.mxu0 %v7375_v4  ;;  %7047 = vmatprep.subr.bf16.mxu1 %v7375_v4 }
 0x6c0   : > { %6765 = vmatprep.mubr.msk.f32.mxu0 %vm7376_vm1, %v7377_v12  ;;  %6776 = vmatprep.mubr.msk.f32.mxu1 %vm7376_vm1, %v7377_v12 }
 0x6c2   : > { %7043 = vmatpush3.bf16.msra.mxu0 %v7042_v19  ;;  %7049 = vmatpush3.bf16.msra.mxu1 %v7048_v36 }
 0x6c3   : > { %7050 = vmatprep.subr.bf16.mxu0 %v7375_v4  ;;  %7056 = vmatprep.subr.bf16.mxu1 %v7375_v4 }
 0x6c5   : > { %6766 = vmatmul.mubr.msk.f32.vlgmr.msra.gmra.mrb[36].mxu0 %vm1568_vm2, %v8003_v16  ;;  %6777 = vmatmul.mubr.msk.f32.vlgmr.msra.gmra.mrb[28].mxu1 %vm1568_vm2, %v8003_v16 }
 0x6c6   : > { %7052 = vmatpush3.bf16.msra.mxu0 %v7051_v39  ;;  %7058 = vmatpush3.bf16.msra.mxu1 %v7057_v42 }
 0x6c7   : > { %7053 = vmatprep.subr.bf16.mxu0 %v7375_v4  ;;  %7059 = vmatprep.subr.bf16.mxu1 %v7375_v4 }
 0x6c8   : > { %6787 = vmatprep.mubr.msk.f32.mxu0 %vm7376_vm1, %v7377_v12  ;;  %6798 = vmatprep.mubr.msk.f32.mxu1 %vm7376_vm1, %v7377_v12 }
 0x6ca   : > { %7055 = vmatpush3.bf16.msra.mxu0 %v7054_v46  ;;  %7061 = vmatpush3.bf16.msra.mxu1 %v7060_v48 }
 0x6cb   : > { %6801 = vmatprep.subr.mxu0 %v7377_v12  ;;  %6806 = vmatprep.subr.mxu1 %v7377_v12 }
 0x6cd   : > { %6788 = vmatmul.mubr.msk.f32.vlgmr.msra.gmra.mrb[38].mxu0 %vm1568_vm2, %v8003_v16  ;;  %6799 = vmatmul.mubr.msk.f32.vlgmr.msra.gmra.mrb[30].mxu1 %vm1568_vm2, %v8003_v16 }
 0x6ce   : > { %6803 = vmatprep.mubr.msk.f32.mxu0 %vm7376_vm1, %v7377_v12  ;;  %6808 = vmatprep.mubr.msk.f32.mxu1 %vm7376_vm1, %v7377_v12 }
 0x778   : > { %v3605_v49 = vpop.f32.mrb[28].mxu0  ;;  %v3675_v50 = vpop.f32.mrb[20].mxu1 }
 0x779   : > { %v6679_v51 = vpop.f32.mrb[29].mxu0  ;;  %v6690_v52 = vpop.f32.mrb[21].mxu1  ;;  %v3606_v5 = vadd.f32 %v6217_v62, %v3605_v49  ;;  %v3676_v6 = vadd.f32 %v6218_v63, %v3675_v50 }
 0x780   : > { %v3745_v53 = vpop.f32.mrb[30].mxu0  ;;  %v3815_v54 = vpop.f32.mrb[22].mxu1 }
 0x781   : > { %v6701_v55 = vpop.f32.mrb[31].mxu0  ;;  %v6712_v57 = vpop.f32.mrb[23].mxu1  ;;  %v3746_v18 = vadd.f32 %v6219_v11, %v3745_v53  ;;  %v3816_v20 = vadd.f32 %v6220_v13, %v3815_v54  ;;  %v6235_v13 = vld [vmem:[%s7687_s6 + $0x2] ss:$0 sm:$0xff] }
 0x788   : > { %v3912_v60 = vpop.f32.mrb[32].mxu0  ;;  %v3982_v61 = vpop.f32.mrb[24].mxu1 }
 0x789   : > { %v3913_v0 = vadd.f32 %v6225_v58, %v3912_v60  ;;  %v3983_v1 = vadd.f32 %v6226_v59, %v3982_v61  ;;  %v6723_v2 = vpop.f32.mrb[33].mxu0  ;;  %v6734_v3 = vpop.f32.mrb[25].mxu1 }
 0x78b   : > { %6802 = vmatpush3.xpose.msk.msra.mxu0 %vm2460_vm3, %v3913_v0  ;;  %6807 = vmatpush3.xpose.msk.msra.mxu1 %vm2460_vm3, %v3983_v1 }
 0x78c   : > { %6811 = vmatprep.subr.mxu0 %v7377_v12  ;;  %6816 = vmatprep.subr.mxu1 %v7377_v12 }
 0x78e   : > { %6804 = vmatmul.mubr.msk.f32.vlgmr.msra.gmra.mrb[40].mxu0 %vm2460_vm3, %v3606_v5  ;;  %6809 = vmatmul.mubr.msk.f32.vlgmr.msra.gmra.mrb[32].mxu1 %vm2460_vm3, %v3676_v6 }
 0x78f   : > { %6813 = vmatprep.mubr.msk.f32.mxu0 %vm7376_vm1, %v7377_v12  ;;  %6818 = vmatprep.mubr.msk.f32.mxu1 %vm7376_vm1, %v7377_v12 }
 0x790   : > { %v4052_v9 = vpop.f32.mrb[34].mxu0  ;;  %v4122_v10 = vpop.f32.mrb[26].mxu1 }
 0x791   : > { %v4053_v14 = vadd.f32 %v6227_v7, %v4052_v9  ;;  %v4123_v15 = vadd.f32 %v6228_v8, %v4122_v10  ;;  %v6745_v16 = vpop.f32.mrb[35].mxu0  ;;  %v6756_v17 = vpop.f32.mrb[27].mxu1  ;;  %v6236_v10 = vld [vmem:[%s7687_s6 + $0x3] ss:$0 sm:$0xff] }
 0x793   : > { %6812 = vmatpush3.xpose.msk.msra.mxu0 %vm2460_vm3, %v4053_v14  ;;  %6817 = vmatpush3.xpose.msk.msra.mxu1 %vm2460_vm3, %v4123_v15 }
 0x794   : > { %6821 = vmatprep.subr.mxu0 %v7377_v12  ;;  %6826 = vmatprep.subr.mxu1 %v7377_v12 }
 0x796   : > { %6814 = vmatmul.mubr.msk.f32.vlgmr.msra.gmra.mrb[42].mxu0 %vm2460_vm3, %v3746_v18  ;;  %6819 = vmatmul.mubr.msk.f32.vlgmr.msra.gmra.mrb[34].mxu1 %vm2460_vm3, %v3816_v20 }
 0x797   : > { %6823 = vmatprep.mubr.msk.f32.mxu0 %vm7376_vm1, %v7377_v12  ;;  %6828 = vmatprep.mubr.msk.f32.mxu1 %vm7376_vm1, %v7377_v12 }
 0x798   : > { %v4216_v23 = vpop.f32.mrb[36].mxu0  ;;  %v4286_v26 = vpop.f32.mrb[28].mxu1 }
 0x799   : > { %v4217_v24 = vadd.f32 %v6233_v21, %v4216_v23  ;;  %v6767_v25 = vpop.f32.mrb[37].mxu0  ;;  %v4287_v27 = vadd.f32 %v6234_v22, %v4286_v26  ;;  %v6778_v28 = vpop.f32.mrb[29].mxu1  ;;  %v3510_v26 = vld [vmem:[%s7690_s12 + $0x18] sm:$0xff] }
 0x79a   : > { %v3508_v25 = vld [vmem:[%s7690_s12 + $0x8] sm:$0xff]  ;;  %v3509_v28 = vld [vmem:[%s7690_s12 + $0x10] sm:$0xff] }
 0x79b   : > { %6822 = vmatpush3.msra.mxu0 %v4217_v24  ;;  %6827 = vmatpush3.msra.mxu1 %v4287_v27  ;;  %v3507_v24 = vld [vmem:[%s7690_s12] sm:$0xff] }
 0x79c   : > { %6831 = vmatprep.subr.mxu0 %v7377_v12  ;;  %6836 = vmatprep.subr.mxu1 %v7377_v12 }
 0x7a0   : > { %v8103_v29 = vpop.f32.mrb[38].mxu0  ;;  %v8105_v30 = vpop.f32.mrb[30].mxu1 }
 0x7a1   : > { %v6789_v31 = vpop.f32.mrb[39].mxu0  ;;  %v6800_v32 = vpop.f32.mrb[31].mxu1  ;;  %v4427_v16 = vadd.f32 %v6236_v10, %v8105_v30  ;;  %v4357_v18 = vadd.f32 %v6235_v13, %v8103_v29  ;;  %v5501_v10 = vld [vmem:[%s7704_s2 + $0x30] sm:$0xff] }
 0x861   : > { %v4502_v33 = vpop.f32.mrb[40].mxu0  ;;  %v4578_v34 = vpop.f32.mrb[32].mxu1 }
 0x862   : > { %v4734_v19 = vmul.f32 0.35355338, %v4502_v33  ;;  %v4735_v35 = vmul.f32 0.35355338, %v4578_v34  ;;  %v6805_v36 = vpop.f32.mrb[41].mxu0  ;;  %v6810_v37 = vpop.f32.mrb[33].mxu1 }
 0x864   : > { %v4741_v38 = vsel %vm2460_vm3, %v4735_v35, -inf  ;;  %v4738_v39 = vsel %vm2460_vm3, %v4734_v19, -inf }
 0x865   : > { %4742 = vmax.xlane.f32.xlu1 %v4741_v38  ;;  %4739 = vmax.xlane.f32.xlu0 %v4738_v39 }
 0x869   : > { %v4654_v40 = vpop.f32.mrb[42].mxu0  ;;  %v4730_v41 = vpop.f32.mrb[34].mxu1 }
 0x86a   : > { %v4736_v42 = vmul.f32 0.35355338, %v4654_v40  ;;  %v4737_v43 = vmul.f32 0.35355338, %v4730_v41  ;;  %v6815_v44 = vpop.f32.mrb[43].mxu0  ;;  %v6820_v45 = vpop.f32.mrb[35].mxu1 }
 0x86c   : > { %v4747_v46 = vsel %vm2460_vm3, %v4737_v43, -inf  ;;  %v4744_v47 = vsel %vm2460_vm3, %v4736_v42, -inf }
 0x86d   : > { %4748 = vmax.xlane.f32.xlu1 %v4747_v46  ;;  %4745 = vmax.xlane.f32.xlu0 %v4744_v47 }
 0x8f2   : > { %v4743_v48 = vpop.xlane.xlu1 %4742  ;;  %v4740_v49 = vpop.xlane.xlu0 %4739 }
 0x8f3   : > { %v4751_v50 = vsub.f32 %v4735_v35, %v4743_v48  ;;  %v4750_v51 = vsub.f32 %v4734_v19, %v4740_v49 }
 0x8f5   : > { %v4756_v52 = vmul.f32 1.442695, %v4751_v50  ;;  %v4754_v53 = vmul.f32 1.442695, %v4750_v51 }
 0x8f7   : > { %7227 = vpow2.f32 %v4756_v52 }
 0x8f8   : > { %7229 = vpow2.f32 %v4754_v53 }
 0x8fa   : > { %v4749_v54 = vpop.xlane.xlu1 %4748  ;;  %v4746_v55 = vpop.xlane.xlu0 %4745 }
 0x8fb   : > { %v4753_v57 = vsub.f32 %v4737_v43, %v4749_v54  ;;  %v4752_v58 = vsub.f32 %v4736_v42, %v4746_v55 }
 0x8fd   : > { %v4760_v59 = vmul.f32 1.442695, %v4753_v57  ;;  %v4758_v60 = vmul.f32 1.442695, %v4752_v58 }
 0x8ff   : > { %7231 = vpow2.f32 %v4760_v59  ;;  %v5410_v59 = vld [vmem:[%s7699_s27] sm:$0xff] }
 0x900   : > { %7233 = vpow2.f32 %v4758_v60  ;;  %v5411_v60 = vld [vmem:[%s7699_s27 + $0x8] sm:$0xff] }
 0x901   : > { %v7228_v61 = vpop.eup %7227 }
 0x902   : > { %v7230_v62 = vpop.eup %7229  ;;  %v4765_v63 = vsel %vm2460_vm3, %v7228_v61, 0.0 }
 0x903   : > { %4766 = vadd.xlane.f32.xlu1 %v4765_v63  ;;  %v4762_v0 = vsel %vm2460_vm3, %v7230_v62, 0.0 }
 0x904   : > { %4763 = vadd.xlane.f32.xlu0 %v4762_v0  ;;  %v5495_v0 = vld [vmem:[%s7704_s2] sm:$0xff] }
 0x909   : > { %v7232_v1 = vpop.eup %7231 }
 0x90a   : > { %v7234_v2 = vpop.eup %7233  ;;  %v4771_v3 = vsel %vm2460_vm3, %v7232_v1, 0.0 }
 0x90b   : > { %4772 = vadd.xlane.f32.xlu1 %v4771_v3  ;;  %v4768_v5 = vsel %vm2460_vm3, %v7234_v2, 0.0 }
 0x90c   : > { %4769 = vadd.xlane.f32.xlu0 %v4768_v5  ;;  %v5498_v5 = vld [vmem:[%s7704_s2 + $0x18] sm:$0xff] }
 0x990   : > { %v4767_v6 = vpop.xlane.xlu1 %4766 }
 0x991   : > { %7235 = vrcp.f32 %v4767_v6  ;;  %v4764_v7 = vpop.xlane.xlu0 %4763 }
 0x992   : > { %7237 = vrcp.f32 %v4764_v7  ;;  %v5499_v7 = vld [vmem:[%s7704_s2 + $0x20] sm:$0xff] }
 0x998   : > { %v4773_v8 = vpop.xlane.xlu1 %4772 }
 0x999   : > { %7239 = vrcp.f32 %v4773_v8  ;;  %v4770_v9 = vpop.xlane.xlu0 %4769  ;;  %v5500_v8 = vld [vmem:[%s7704_s2 + $0x28] sm:$0xff] }
 0x99a   : > { %7241 = vrcp.f32 %v4770_v9  ;;  %v7075_v9 = vpack.c.bf16 %v5500_v8, %v5499_v7 }
 0x99b   : > { %v7236_v11 = vpop.eup %7235 }
 0x99c   : > { %v7238_v14 = vpop.eup %7237  ;;  %v4777_v15 = vmul.f32 %v7236_v11, %v7228_v61  ;;  %v7063_v61 = vpack.c.bf16 %v5411_v60, %v5410_v59  ;;  %v5502_v11 = vld [vmem:[%s7704_s2 + $0x38] sm:$0xff] }
 0x99d   : > { %v4775_v17 = vmul.f32 %v7238_v14, %v7230_v62  ;;  %v5413_v62 = vld [vmem:[%s7699_s27 + $0x18] sm:$0xff]  ;;  %v7078_v13 = vpack.c.bf16 %v5502_v11, %v5501_v10  ;;  %v5503_v14 = vld [vmem:[%s7704_s2 + $0x40] sm:$0xff] }
 0x99e   : > { %6829 = vmatmul.mubr.msk.f32.vlgmr.msra.gmra.mrb[36].mxu1 %vm2460_vm3, %v4777_v15  ;;  %v5504_v15 = vld [vmem:[%s7704_s2 + $0x48] sm:$0xff] }
 0x99f   : > { %6824 = vmatmul.mubr.msk.f32.vlgmr.msra.gmra.mrb[44].mxu0 %vm2460_vm3, %v4775_v17  ;;  %6837 = vmatpush3.msra.mxu1 %v4427_v16  ;;  %v7081_v16 = vpack.c.bf16 %v5504_v15, %v5503_v14  ;;  %v5505_v17 = vld [vmem:[%s7704_s2 + $0x50] sm:$0xff] }
 0x9a0   : > { %6832 = vmatpush3.msra.mxu0 %v4357_v18  ;;  %6833 = vmatprep.mubr.msk.f32.mxu0 %vm7376_vm1, %v7377_v12  ;;  %v5506_v18 = vld [vmem:[%s7704_s2 + $0x58] sm:$0xff] }
 0x9a1   : > { %6838 = vmatprep.mubr.msk.f32.mxu1 %vm7376_vm1, %v7377_v12  ;;  %6841 = vmatprep.subr.mxu0 %v7377_v12 }
 0x9a2   : > { %6846 = vmatprep.subr.mxu1 %v7377_v12 }
 0x9a3   : > { %v7240_v20 = vpop.eup %7239 }
 0x9a4   : > { %v7242_v21 = vpop.eup %7241  ;;  %v4781_v22 = vmul.f32 %v7240_v20, %v7232_v1  ;;  %v5496_v1 = vld [vmem:[%s7704_s2 + $0x8] sm:$0xff]  ;;  %v7084_v20 = vpack.c.bf16 %v5506_v18, %v5505_v17 }
 0x9a5   : > { %v4779_v23 = vmul.f32 %v7242_v21, %v7234_v2  ;;  %v5497_v2 = vld [vmem:[%s7704_s2 + $0x10] sm:$0xff]  ;;  %v7069_v3 = vpack.c.bf16 %v5496_v1, %v5495_v0  ;;  %v5507_v21 = vld [vmem:[%s7704_s2 + $0x60] sm:$0xff] }
 0x9a6   : > { %6839 = vmatmul.mubr.msk.f32.vlgmr.msra.gmra.mrb[38].mxu1 %vm2460_vm3, %v4781_v22  ;;  %v7072_v6 = vpack.c.bf16 %v5498_v5, %v5497_v2  ;;  %v5508_v22 = vld [vmem:[%s7704_s2 + $0x68] sm:$0xff] }
 0x9a7   : > { %6834 = vmatmul.mubr.msk.f32.vlgmr.msra.gmra.mrb[46].mxu0 %vm2460_vm3, %v4779_v23  ;;  %6848 = vmatprep.mubr.msk.f32.mxu1 %vm7376_vm1, %v7377_v12  ;;  %v7087_v23 = vpack.c.bf16 %v5508_v22, %v5507_v21 }
 0x9a8   : > { %6843 = vmatprep.mubr.msk.f32.mxu0 %vm7376_vm1, %v7377_v12  ;;  %6842 = vmatpush3.msra.mxu0 %v3507_v24 }
 0x9a9   : > { %6847 = vmatpush3.msra.mxu1 %v3508_v25  ;;  %6851 = vmatprep.subr.mxu0 %v7377_v12 }
 0x9aa   : > { %6856 = vmatprep.subr.mxu1 %v7377_v12 }
 0xa71   : > { %v4924_v27 = vpop.f32.mrb[36].mxu1 }
 0xa72   : > { %v4851_v29 = vpop.f32.mrb[44].mxu0  ;;  %v6830_v30 = vpop.f32.mrb[37].mxu1  ;;  %6849 = vmatmul.mubr.msk.f32.vlgmr.msra.gmra.mrb[40].mxu1 %vm2460_vm3, %v4924_v27 }
 0xa73   : > { %v6825_v31 = vpop.f32.mrb[45].mxu0  ;;  %6844 = vmatmul.mubr.msk.f32.vlgmr.msra.gmra.mrb[48].mxu0 %vm2460_vm3, %v4851_v29  ;;  %6857 = vmatpush3.msra.mxu1 %v3510_v26  ;;  %v6259_v30 = vld [vmem:[%s1447_s20] ss:$0 sm:$0xff] }
 0xa74   : > { %6852 = vmatpush3.msra.mxu0 %v3509_v28  ;;  %6853 = vmatprep.mubr.msk.f32.mxu0 %vm7376_vm1, %v7377_v12  ;;  %v6258_v28 = vld [vmem:[%s1444_s5] ss:$0 sm:$0xff]  ;;  %s8426_s5 = scalar_lea.vmem %s8425_s3, %s8416_s13 }
 0xa75   : > { %6858 = vmatprep.mubr.msk.f32.mxu1 %vm7376_vm1, %v7377_v12  ;;  %7062 = vmatprep.subr.bf16.mxu0 %v7375_v4 }
 0xa76   : > { %7068 = vmatprep.subr.bf16.mxu1 %v7375_v4 }
 0xa79   : > { %v5070_v32 = vpop.f32.mrb[38].mxu1 }
 0xa7a   : > { %v4997_v33 = vpop.f32.mrb[46].mxu0  ;;  %v6840_v34 = vpop.f32.mrb[39].mxu1  ;;  %6859 = vmatmul.mubr.msk.f32.vlgmr.msra.gmra.mrb[42].mxu1 %vm2460_vm3, %v5070_v32 }
 0xa7b   : > { %v6835_v19 = vpop.f32.mrb[47].mxu0  ;;  %6854 = vmatmul.mubr.msk.f32.vlgmr.msra.gmra.mrb[50].mxu0 %vm2460_vm3, %v4997_v33  ;;  %6904 = vmatprep.mubr.msk.f32.mxu1 %vm7376_vm1, %v7377_v12  ;;  %v5509_v33 = vld [vmem:[%s7704_s2 + $0x70] sm:$0xff] }
 0xa7c   : > { %6869 = vmatprep.mubr.msk.f32.mxu0 %vm7376_vm1, %v7377_v12  ;;  %v6257_v12 = vld [vmem:[%s1441_s14] ss:$0 sm:$0xff]  ;;  %7064 = vmatpush3.bf16.msra.mxu0 %v7063_v61 }
 0xa7d   : > { %7065 = vmatprep.subr.bf16.mxu0 %v7375_v4  ;;  %7070 = vmatpush3.bf16.msra.mxu1 %v7069_v3  ;;  %v6260_v19 = vld [vmem:[%s1455_s11] ss:$0 sm:$0xff] }
 0xa7e   : > { %7071 = vmatprep.subr.bf16.mxu1 %v7375_v4 }
 0xa81   : > { %7073 = vmatpush3.bf16.msra.mxu1 %v7072_v6 }
 0xa82   : > { %7074 = vmatprep.subr.bf16.mxu1 %v7375_v4 }
 0xa85   : > { %7076 = vmatpush3.bf16.msra.mxu1 %v7075_v9 }
 0xa86   : > { %7077 = vmatprep.subr.bf16.mxu1 %v7375_v4 }
 0xa89   : > { %7079 = vmatpush3.bf16.msra.mxu1 %v7078_v13 }
 0xa8a   : > { %7080 = vmatprep.subr.bf16.mxu1 %v7375_v4 }
 0xa8d   : > { %7082 = vmatpush3.bf16.msra.mxu1 %v7081_v16 }
 0xa8e   : > { %7083 = vmatprep.subr.bf16.mxu1 %v7375_v4 }
 0xa91   : > { %7085 = vmatpush3.bf16.msra.mxu1 %v7084_v20 }
 0xa92   : > { %7086 = vmatprep.subr.bf16.mxu1 %v7375_v4 }
 0xa95   : > { %7088 = vmatpush3.bf16.msra.mxu1 %v7087_v23 }
 0xa96   : > { %7089 = vmatprep.subr.bf16.mxu1 %v7375_v4  ;;  %v5510_v4 = vld [vmem:[%s7704_s2 + $0x78] sm:$0xff] }
 0xa97   : > { %v7090_v34 = vpack.c.bf16 %v5510_v4, %v5509_v33 }
 0xa99   : > { %7091 = vmatpush3.bf16.msra.mxu1 %v7090_v34 }
 0xb45   : > { %v5216_v35 = vpop.f32.mrb[40].mxu1 }
 0xb46   : > { %v5143_v36 = vpop.f32.mrb[48].mxu0  ;;  %v5367_v37 = vsel %vm1568_vm2, %v5216_v35, 0.0  ;;  %v6850_v38 = vpop.f32.mrb[41].mxu1 }
 0xb47   : > { %v5366_v39 = vsel %vm1568_vm2, %v5143_v36, 0.0  ;;  %v6845_v40 = vpop.f32.mrb[49].mxu0 }
 0xb48   : > { %v5368_v41 = vadd.f32 %v5367_v37, %v5366_v39  ;;  %v6262_v40 = vld [vmem:[%s1463_s29] ss:$0 sm:$0xff]  ;;  %s8429_s29 = sld [smem:[#allocation42_spill]] }
 0xb4d   : > { %v5362_v42 = vpop.f32.mrb[42].mxu1 }
 0xb4e   : > { %v5289_v43 = vpop.f32.mrb[50].mxu0  ;;  %v6860_v44 = vpop.f32.mrb[43].mxu1  ;;  %v5371_v48 = vsel %vm1568_vm2, %v5362_v42, 0.0  ;;  %p6265_p1 = scmp.ne.s32.totalorder %s8429_s29, 1 }
 0xb4f   : > { %v5369_v45 = vsel %vm1568_vm2, %v5289_v43, 0.0  ;;  %v6855_v46 = vpop.f32.mrb[51].mxu0  ;;  %s8430_s2 = sld [smem:[#allocation10_spill]] (!%p6265_p1)  ;;  %s8432_s19 = sld [smem:[#allocation11_spill]] (!%p6265_p1)  ;;  %v7379_v1 = vmov (!%p6265_p1), 0.0|0.0   ;;  %vm7380_vm4 = vmmov (!%p6265_p1), 0  }
 0xb50   : > { %v5370_v47 = vadd.f32 %v5369_v45, %v5368_v41  ;;  %v5619_v45 = vld [vmem:[%s8426_s5] sm:$0xff]  ;;  %v7378_v46 = vmov 0   ;;  %v7381_v5 = vmov (!%p6265_p1), 0.0  }
 0xb51   : > { %7208 = vset.pattern.permute.xlu0 %v7378_v46 }
 0xb52   : > { %v5372_v49 = vadd.f32 %v5371_v48, %v5370_v47 }
 0xb54   : > { %v5379_v50 = vadd.f32 %v6257_v12, %v5372_v49 }
 0xb55   : > { %s8431_s8 = smov (!%p6265_p1), %s8430_s2  ;;  %v6266_v7 = vld [vmem:[%s8432_s19] ss:$0 sm:$0xff] (!%p6265_p1) }
 0xb56   : > { %v5380_v51 = vadd.f32 %v5379_v50, %v7961_v56  ;;  %v5412_v56 = vld [vmem:[%s7699_s27 + $0x10] sm:$0xff]  ;;  %v5634_v3 = vld [vmem:[%s8431_s8 + $0x18] sm:$0xff] (!%p6265_p1) }
 0xb57   : > { %v7066_v63 = vpack.c.bf16 %v5413_v62, %v5412_v56  ;;  %v5631_v62 = vld [vmem:[%s8430_s2] sm:$0xff] (!%p6265_p1)  ;;  %v5633_v0 = vld [vmem:[%s8431_s8 + $0x10] sm:$0xff] (!%p6265_p1) }
 0xb58   : > { %v5383_v52 = vsel %vm1568_vm2, %v5380_v51, 0.0  ;;  %v7096_v6 = vpack.c.bf16 (!%p6265_p1), %v5634_v3, %v5633_v0 }
 0xb59   : > { %5384 = vadd.xlane.f32.xlu0 %v5383_v52  ;;  %7067 = vmatpush3.bf16.msra.mxu0 %v7066_v63  ;;  %v5632_v63 = vld [vmem:[%s8431_s8 + $0x8] sm:$0xff] (!%p6265_p1) }
 0xb5a   : > { %7092 = vmatprep.subr.bf16.mxu0 (!%p6265_p1), %v7379_v1  ;;  %v7093_v2 = vpack.c.bf16 (!%p6265_p1), %v5632_v63, %v5631_v62 }
 0xbe6   : > { %v5385_v53 = vpop.xlane.xlu0 %5384 }
 0xbe7   : > { %v5386_v54 = vmul.f32 0.03125, %v5385_v53 }
 0xbe9   : > { %v5387_v55 = vsub.f32 %v5380_v51, %v5386_v54 }
 0xbeb   : > { %v5388_v57 = vmul.f32 %v5387_v55, %v5387_v55 }
 0xbed   : > { %v5389_v58 = vsel %vm1568_vm2, %v5388_v57, 0.0 }
 0xbee   : > { %5390 = vadd.xlane.f32.xlu1 %v5389_v58  ;;  %v6264_v58 = vld [vmem:[%s1469_s30] ss:$0 sm:$0xff] }
 0xc7b   : > { %v5391_v24 = vpop.xlane.xlu1 %5390 }
 0xc7c   : > { %v5392_v25 = vmul.f32 0.03125, %v5391_v24 }
 0xc7e   : > { %v5393_v26 = vadd.f32 1e-05, %v5392_v25 }
 0xc80   : > { %7243 = vrsqrt.f32 %v5393_v26 }
 0xc8a   : > { %v7244_v27 = vpop.eup %7243 }
 0xc8b   : > { %v5395_v29 = vmul.f32 %v7244_v27, %v5387_v55  ;;  %v6263_v55 = vld [vmem:[%s1466_s28] ss:$0 sm:$0xff] }
 0xc8d   : > { %v5402_v31 = vmul.f32 %v6258_v28, %v5395_v29 }
 0xc8f   : > { %v5409_v32 = vadd.f32 %v6259_v30, %v5402_v31 }
 0xc91   : > { %6870 = vmatmul.mubr.msk.f32.vlgmr.msra.gmra.mrb[52].mxu0 %vm1568_vm2, %v5409_v32 }
 0xc92   : > { %6915 = vmatprep.mubr.msk.f32.mxu0 (!%p6265_p1), %vm7380_vm4, %v7381_v5  ;;  %7094 = vmatpush3.bf16.msra.mxu0 (!%p6265_p1), %v7093_v2 }
 0xc93   : > { %7095 = vmatprep.subr.bf16.mxu0 (!%p6265_p1), %v7379_v1 }
 0xc96   : > { %7097 = vmatpush3.bf16.msra.mxu0 (!%p6265_p1), %v7096_v6 }
 0xd64   : > { %v5490_v35 = vpop.f32.mrb[52].mxu0 }
 0xd65   : > { %v5491_v36 = vadd.f32 %v6260_v19, %v5490_v35  ;;  %v6871_v37 = vpop.f32.mrb[53].mxu0 }
 0xd67   : > { %v5494_v38 = vmax.f32 %v5491_v36, 0.0 }
 0xd69   : > { %6905 = vmatmul.mubr.f32.vlgmr.msra.gmra.mrb[44].mxu1 %v5494_v38 }
 0xe3c   : > { %v5577_v39 = vpop.f32.mrb[44].mxu1 }
 0xe3d   : > { %v5581_v41 = vadd.f32 %v5577_v39, %v5409_v32  ;;  %v6906_v42 = vpop.f32.mrb[45].mxu1 }
 0xe3f   : > { %v5589_v43 = vadd.f32 %v6262_v40, %v5581_v41 }
 0xe41   : > { %v5592_v44 = vsel %vm1568_vm2, %v5589_v43, 0.0 }
 0xe42   : > { %5593 = vadd.xlane.f32.xlu0 %v5592_v44 }
 0xe58   : > { %5622 = vperm.xlu0 %7208, %v5619_v45  }
 0xecf   : > { %v5594_v47 = vpop.xlane.xlu0 %5593 }
 0xed0   : > { %v5595_v12 = vmul.f32 0.03125, %v5594_v47 }
 0xed2   : > { %v5596_v48 = vsub.f32 %v5589_v43, %v5595_v12 }
 0xed4   : > { %v5597_v49 = vmul.f32 %v5596_v48, %v5596_v48 }
 0xed6   : > { %v5598_v50 = vsel %vm1568_vm2, %v5597_v49, 0.0 }
 0xed7   : > { %5599 = vadd.xlane.f32.xlu1 %v5598_v50  ;;  %v5623_v60 = vpop.permute.xlu0 %5622 }
 0xf64   : > { %v5600_v51 = vpop.xlane.xlu1 %5599 }
 0xf65   : > { %v5601_v52 = vmul.f32 0.03125, %v5600_v51 }
 0xf67   : > { %v5602_v53 = vadd.f32 1e-05, %v5601_v52 }
 0xf69   : > { %7245 = vrsqrt.f32 %v5602_v53 }
 0xf73   : > { %v7246_v54 = vpop.eup %7245 }
 0xf74   : > { %v5604_v57 = vmul.f32 %v7246_v54, %v5596_v48 }
 0xf76   : > { %v5611_v59 = vmul.f32 %v6263_v55, %v5604_v57  ;;  %5630 = sbr.rel (%p6265_p1) target bundleno = 4179 (0x1053), region = 156 }
 0xf78   : > { %v5618_v61 = vadd.f32 %v6264_v58, %v5611_v59 }
 0xf7a   : > { %v5625_v56 = vmul.f32 %v5623_v60, %v5618_v61 }
 0xf7c   : > { %5626 = vst.msk [vmem:[#allocation2] sm:$0xff] %vm1568_vm2, %v5625_v56  ;;  %6916 = vmatmul.mubr.msk.f32.vlgmr.msra.gmra.mrb[0].mxu0 (!%p6265_p1), %vm1568_vm2, %v5625_v56 }
0x104f   : > { %v5711_v8 = vpop.f32.mrb[0].mxu0 }
0x1050   : > { %v5712_v9 = vadd.f32 %v6266_v7, %v5711_v8  ;;  %v6917_v10 = vpop.f32.mrb[1].mxu0 }
0x1052   : > { %5715 = vst [vmem:[%s1353_s26] sm:$0xff] %v5712_v9 }
0x1053 PF: > { %s8434_s30 = sld [smem:[#allocation43_spill]]  ;;  %s8435_s28 = sld [smem:[#allocation38_spill]] }
0x1054   : > { %s8438_s7 = sld [smem:[#allocation40_spill]]  ;;  %s5730_s22 = sshll.u32 %s1353_s26, 4  ;;  %s5731_s22 = int_to_ptr.vmem [resolvable:$true] %s5730_s22 }
0x1055   : > { %s7247_s0 = scalar_lea.vmem %s5731_s22, 128  ;;  %s7382_s13 = smov [#allocation3]  }
0x1056   : > { %p7248_p2 = scmp.ne.s32.totalorder %s5731_s22, %s7247_s0  ;;  %s7251_s9 = sshll.u32 %s7382_s13, 4  ;;  %s7252_s9 = int_to_ptr.vmem [resolvable:$false] %s7251_s9 }
0x1057   : > { %s7253_s17 = scalar_lea.vmem %s7252_s9, 256  ;;  %p7254_p6 = scmp.lt.s32.totalorder %s5731_s22, %s7252_s9 }
0x1058   : > { %p7249_p4 = pnand %p7248_p2, %p7602_p3  ;;  %p7255_p7 = scmp.lt.s32.totalorder %s7253_s17, %s7247_s0 }
0x1059   : > { %s8436_s24 = smov %s8435_s28  ;;  %s6269_s16 = sshll.u32 %s8434_s30, 7 }
0x105a   : > { %s8227_s18 = scalar_lea.hbm %s8435_s28, %s6269_s16  ;;  %s8440_s10 = sand.u32 1, %s8438_s7  }
0x105b   : > { %s5717_s25 = scalar_lea.sflag [#allocation4], %s8440_s10  ;;  %p7250_p5 = pneg %p7249_p4 }
0x105c   : > { %p7256_p8 = por %p7255_p7, %p7254_p6 }
0x105e   : > { %p7257_p10 = pnand %p7256_p8, %p7250_p5 }
0x1060   : > { %7260 = shalt.err (!%p7257_p10)
}
0x1061   : > { %s7261_s26 = scalar_lea.hbm %s8227_s18, 128  ;;  %s7265_s21 = scalar_lea.hbm %s8436_s24, 256 }
0x1062   : > { %p7262_p11 = scmp.ne.s32.totalorder %s8227_s18, %s7261_s26  ;;  %p7266_p0 = scmp.lt.u32.totalorder %s8227_s18, %s8436_s24 }
0x1063   : > { %p7267_p1 = scmp.lt.u32.totalorder %s7265_s21, %s7261_s26  ;;  %p7269_p4 = scmp.lt.u32.totalorder %s7261_s26, %s8227_s18 }
0x1064   : > { %p7263_p12 = pnand %p7262_p11, %p7602_p3 }
0x1065   : > { %p7268_p2 = por %p7267_p1, %p7266_p0 }
0x1066   : > { %p7264_p13 = pneg %p7263_p12 }
0x1067   : > { %p7270_p6 = por %p7269_p4, %p7268_p2 }
0x1069   : > { %p7271_p5 = pnand %p7270_p6, %p7264_p13 }
0x106b   : > { %7274 = shalt.err (!%p7271_p5)
}
0x106c   : > { %7098 = dma.vmem_to_hbm [thread:$0]  (%p7602_p3), %s5731_s22, 128, %s8227_s18, %s5717_s25  }
0x106d PF: > { %s8441_s6 = sld [smem:[#allocation46_spill]]  ;;  %s8442_s14 = sld [smem:[#allocation39_spill]] }
0x1073   : > { %p7104_p7 = scmp.ge.s32.totalorder %s8441_s6, 2  ;;  %s5742_s27 = sand.u32 1, %s8442_s14  }
0x1074   : > { %s5743_s1 = scalar_lea.sflag [#allocation4], %s5742_s27 }
0x1075   : > { %p7101_p8 = pnand %p7104_p7, %p7612_p9 }
0x1077   : > { %7308 = dma.done.wait (!%p7101_p8), %s5743_s1, 128  }
0x1078   : > { %7310 = vsyncadd (!%p7101_p8), %s5743_s1, 4294967168  ;;  %s78_s16 = sadd.s32 1, %s8441_s6   ;;  %s8444_s28 = sld [smem:[#allocation40_spill]] }
0x1079   : > { %p75_p10 = scmp.ge.s32.totalorder %s78_s16, 6   ;;  %s8445_s1 = sld [smem:[#allocation41_spill]] }
0x107a   : > { %s8446_s2 = sld [smem:[#allocation51_spill]]  ;;  %s8447_s7 = sld [smem:[#allocation44_spill]] }
0x107b   : > { %s8448_s10 = sld [smem:[#allocation45_spill]]  ;;  %s8449_s11 = sld [smem:[#allocation47_spill]] }
0x107c   : > { %s8450_s15 = sld [smem:[#allocation49_spill]]  ;;  %77 = sbr.rel (!%p75_p10) target bundleno = 81 (0x51), region = 307 }
0x1083   :  { %5748 = vsyncpa [#allocation4], 1 }
0x1084   :  { %5750 = vsyncpa [#allocation4 + $0x1], 1 }

</bundles_post_ra>
